<compile_context>
chip_gen: v6e
topology: v6e:2x2x1
jax: 0.10.0
libtpu: 0.0.40
codegen_flags: <defaults>
</compile_context>

<pallas_src>
import jax
import jax.numpy as jnp
from jax.experimental import pallas as pl
from jax.experimental.pallas import tpu as pltpu

_LANE = 128

# Constants for the in-kernel atan2 (Cephes atanf style).
_PI = 3.14159265358979323846
_PI_2 = 1.57079632679489661923
_PI_4 = 0.78539816339744830962
_TAN_3PI_8 = 2.414213562373095
_TAN_PI_8 = 0.4142135623730951


def _atan2(y, x):
    """Elementwise float32 atan2(y, x) from Mosaic-safe ops (VPU + EUP).

    Range reduction to |z| <= tan(pi/8), odd minimax polynomial, quadrant
    fix-ups via jnp.where. Peak error ~2.4e-7.
    """
    safe_x = jnp.where(x == 0.0, 1.0, x)
    t = y / safe_x
    at = jnp.abs(t)

    hi = at > _TAN_3PI_8               # |t| in (tan(3pi/8), inf)
    mid = at > _TAN_PI_8               # hi takes priority below

    safe_at = jnp.where(at == 0.0, 1.0, at)
    z = jnp.where(hi, -1.0 / safe_at,
                  jnp.where(mid, (at - 1.0) / (at + 1.0), at))
    offs = jnp.where(hi, _PI_2, jnp.where(mid, _PI_4, 0.0))

    z2 = z * z
    p = 8.05374449538e-2 * z2 - 1.38776856032e-1
    p = p * z2 + 1.99777106478e-1
    p = p * z2 - 3.33329491539e-1
    a_abs = offs + (p * z2 * z + z)
    a = jnp.where(t < 0.0, -a_abs, a_abs)

    # Quadrant correction for x < 0, then the x == 0 column.
    a = jnp.where(x < 0.0, jnp.where(y < 0.0, a - _PI, a + _PI), a)
    a = jnp.where(x == 0.0,
                  jnp.where(y > 0.0, _PI_2,
                            jnp.where(y < 0.0, -_PI_2, 0.0)),
                  a)
    return a


def _polarnet_kernel(x_ref, y_ref, w1r_ref, w1a_ref, b1_ref, w2_ref, b2_ref,
                     o_ref):
    # x_ref / y_ref / o_ref : (TILE_ROWS, 128) lane-dense sample blocks (VMEM)
    # w1r/w1a/b1/w2 : (H,) float32 in SMEM;  b2 : (1,) float32 in SMEM
    xb = x_ref[...]
    yb = y_ref[...]

    # Fused polar conversion (mirrors the module's off-graph numpy xy_to_ra).
    r = jnp.sqrt(xb * xb + yb * yb)
    a = _atan2(yb, xb)

    # Linear(2,H) -> tanh -> Linear(H,1) without the MXU: the K=2 contraction
    # and lane-width-1 output are degenerate for the systolic array, so use
    # SMEM-scalar broadcast FMAs (VPU) + tanh/sigmoid (EUP) and accumulate the
    # output column directly.
    num_hid = w1r_ref.shape[0]
    z = jnp.zeros_like(xb)
    for j in range(num_hid):           # static unroll, H is small
        hj = jnp.tanh(w1r_ref[j] * r + w1a_ref[j] * a + b1_ref[j])
        z = z + w2_ref[j] * hj
    o_ref[...] = jax.nn.sigmoid(z + b2_ref[0])


def polarnet_forward(x, w1, b1, w2, b2, *, tile_rows=16):
    """PolarNet forward. x: (N, 2) float32 cartesian coords -> (N, 1) float32."""
    n = x.shape[0]
    num_hid = w1.shape[1]
    block = tile_rows * _LANE                       # samples per grid step
    n_pad = pl.cdiv(n, block) * block

    # Layout plumbing only (not compute): de-interleave the (N, 2) pairs into
    # two lane-dense planes of shape (n_pad/128, 128). Pad with (x=1, y=0) so
    # sqrt/atan2 stay well-defined; padded rows are sliced off afterwards.
    xs = jnp.pad(x[:, 0].astype(jnp.float32), (0, n_pad - n),
                 constant_values=1.0)
    ys = jnp.pad(x[:, 1].astype(jnp.float32), (0, n_pad - n),
                 constant_values=0.0)
    xs2 = xs.reshape(n_pad // _LANE, _LANE)
    ys2 = ys.reshape(n_pad // _LANE, _LANE)

    # Tiny parameters as flat float32 vectors for SMEM residency.
    w1_r = w1[0, :].reshape(num_hid).astype(jnp.float32)
    w1_a = w1[1, :].reshape(num_hid).astype(jnp.float32)
    b1_v = b1.reshape(num_hid).astype(jnp.float32)
    w2_v = w2.reshape(num_hid).astype(jnp.float32)
    b2_v = b2.reshape(1).astype(jnp.float32)

    sample_spec = pl.BlockSpec((tile_rows, _LANE), lambda i: (i, 0))
    smem_spec = pl.BlockSpec(memory_space=pltpu.MemorySpace.SMEM)

    cost = pl.CostEstimate(
        flops=int(n_pad * (6 * num_hid + 24)),
        transcendentals=int(n_pad * (num_hid + 4)),
        bytes_accessed=int(3 * n_pad * 4 + (4 * num_hid + 1) * 4),
    )

    out2 = pl.pallas_call(
        _polarnet_kernel,
        out_shape=jax.ShapeDtypeStruct((n_pad // _LANE, _LANE), jnp.float32),
        grid=(n_pad // block,),
        in_specs=[sample_spec, sample_spec,
                  smem_spec, smem_spec, smem_spec, smem_spec, smem_spec],
        out_specs=sample_spec,
        compiler_params=pltpu.CompilerParams(
            dimension_semantics=("parallel",)),
        cost_estimate=cost,
    )(xs2, ys2, w1_r, w1_a, b1_v, w2_v, b2_v)

    return out2.reshape(n_pad)[:n].reshape(n, 1)


def _reference_forward(x, w1, b1, w2, b2):
    r = jnp.sqrt(x[:, 0] ** 2 + x[:, 1] ** 2)
    a = jnp.arctan2(x[:, 1], x[:, 0])
    xra = jnp.stack([r, a], axis=-1)
    h = jnp.tanh(xra @ w1 + b1)
    return jax.nn.sigmoid(h @ w2 + b2)


if __name__ == "__main__":
    num_hid = 32
    batch = 8

    key = jax.random.PRNGKey(0)
    kx, kw1, kb1, kw2, kb2 = jax.random.split(key, 5)

    # Shapes per nn.Linear(2, H) and nn.Linear(H, 1) (x @ w convention).
    x = jax.random.normal(kx, (batch, 2), dtype=jnp.float32)
    w1 = jax.random.normal(kw1, (2, num_hid), dtype=jnp.float32) * 0.5
    b1 = jax.random.normal(kb1, (num_hid,), dtype=jnp.float32) * 0.1
    w2 = jax.random.normal(kw2, (num_hid, 1), dtype=jnp.float32) * 0.5
    b2 = jax.random.normal(kb2, (1,), dtype=jnp.float32) * 0.1

    out = polarnet_forward(x, w1, b1, w2, b2)
    out = jax.block_until_ready(out)

    ref = _reference_forward(x, w1, b1, w2, b2)
    assert out.shape == (batch, 1)
    assert jnp.allclose(out, ref, atol=1e-5, rtol=1e-5), \
        float(jnp.max(jnp.abs(out - ref)))

    print("KERNEL_OK")
</pallas_src>

<mosaic_0001>
module attributes {stable_mosaic.version = 11 : i64} {
  func.func @_polarnet_kernel(%arg0: i32, %arg1: memref<16x128xf32, #tpu.memory_space<vmem>>, %arg2: memref<16x128xf32, #tpu.memory_space<vmem>>, %arg3: memref<32xf32, #tpu.memory_space<smem>>, %arg4: memref<32xf32, #tpu.memory_space<smem>>, %arg5: memref<32xf32, #tpu.memory_space<smem>>, %arg6: memref<32xf32, #tpu.memory_space<smem>>, %arg7: memref<1xf32, #tpu.memory_space<smem>>, %arg8: memref<16x128xf32, #tpu.memory_space<vmem>>) attributes {dimension_semantics = [#tpu.dimension_semantics<parallel>], iteration_bounds = array<i64: 1>, scalar_prefetch = 0 : i64, scratch_operands = 0 : i64, tpu.core_type = #tpu.core_type<tc>, window_params = [{transform_indices = @transform_0, window_bounds = array<i64: 16, 128>}, {transform_indices = @transform_1, window_bounds = array<i64: 16, 128>}, {transform_indices = @transform_2, window_bounds = array<i64: 32>}, {transform_indices = @transform_3, window_bounds = array<i64: 32>}, {transform_indices = @transform_4, window_bounds = array<i64: 32>}, {transform_indices = @transform_5, window_bounds = array<i64: 32>}, {transform_indices = @transform_6, window_bounds = array<i64: 1>}, {transform_indices = @transform_7, window_bounds = array<i64: 16, 128>}]} {
    %c0 = arith.constant 0 : index
    %c0_0 = arith.constant 0 : index
    %0 = vector.load %arg1[%c0, %c0_0] : memref<16x128xf32, #tpu.memory_space<vmem>>, vector<16x128xf32>
    %c0_1 = arith.constant 0 : index
    %c0_2 = arith.constant 0 : index
    %1 = vector.load %arg2[%c0_1, %c0_2] : memref<16x128xf32, #tpu.memory_space<vmem>>, vector<16x128xf32>
    %2 = arith.mulf %0, %0 : vector<16x128xf32>
    %3 = arith.mulf %1, %1 : vector<16x128xf32>
    %4 = arith.addf %2, %3 : vector<16x128xf32>
    %5 = math.sqrt %4 : vector<16x128xf32>
    %cst = arith.constant 0.000000e+00 : f32
    %6 = vector.broadcast %cst : f32 to vector<16x128xf32>
    %7 = arith.cmpf oeq, %0, %6 : vector<16x128xf32>
    %cst_3 = arith.constant 1.000000e+00 : f32
    %8 = vector.broadcast %cst_3 : f32 to vector<16x128xf32>
    %9 = arith.select %7, %8, %0 : vector<16x128xi1>, vector<16x128xf32>
    %10 = arith.divf %1, %9 : vector<16x128xf32>
    %11 = math.absf %10 : vector<16x128xf32>
    %cst_4 = arith.constant 2.41421366 : f32
    %12 = vector.broadcast %cst_4 : f32 to vector<16x128xf32>
    %13 = arith.cmpf ogt, %11, %12 : vector<16x128xf32>
    %cst_5 = arith.constant 0.414213568 : f32
    %14 = vector.broadcast %cst_5 : f32 to vector<16x128xf32>
    %15 = arith.cmpf ogt, %11, %14 : vector<16x128xf32>
    %cst_6 = arith.constant 0.000000e+00 : f32
    %16 = vector.broadcast %cst_6 : f32 to vector<16x128xf32>
    %17 = arith.cmpf oeq, %11, %16 : vector<16x128xf32>
    %cst_7 = arith.constant 1.000000e+00 : f32
    %18 = vector.broadcast %cst_7 : f32 to vector<16x128xf32>
    %19 = arith.select %17, %18, %11 : vector<16x128xi1>, vector<16x128xf32>
    %cst_8 = arith.constant -1.000000e+00 : f32
    %20 = vector.broadcast %cst_8 : f32 to vector<16x128xf32>
    %21 = arith.divf %20, %19 : vector<16x128xf32>
    %cst_9 = arith.constant 1.000000e+00 : f32
    %22 = vector.broadcast %cst_9 : f32 to vector<16x128xf32>
    %23 = arith.subf %11, %22 : vector<16x128xf32>
    %cst_10 = arith.constant 1.000000e+00 : f32
    %24 = vector.broadcast %cst_10 : f32 to vector<16x128xf32>
    %25 = arith.addf %11, %24 : vector<16x128xf32>
    %26 = arith.divf %23, %25 : vector<16x128xf32>
    %27 = arith.select %15, %26, %11 : vector<16x128xi1>, vector<16x128xf32>
    %28 = arith.select %13, %21, %27 : vector<16x128xi1>, vector<16x128xf32>
    %cst_11 = arith.constant 0.785398185 : f32
    %cst_12 = arith.constant 0.000000e+00 : f32
    %29 = vector.broadcast %cst_11 : f32 to vector<16x128xf32>
    %30 = vector.broadcast %cst_12 : f32 to vector<16x128xf32>
    %31 = arith.select %15, %29, %30 : vector<16x128xi1>, vector<16x128xf32>
    %cst_13 = arith.constant 1.57079637 : f32
    %32 = vector.broadcast %cst_13 : f32 to vector<16x128xf32>
    %33 = arith.select %13, %32, %31 : vector<16x128xi1>, vector<16x128xf32>
    %34 = arith.mulf %28, %28 : vector<16x128xf32>
    %cst_14 = arith.constant 0.0805374458 : f32
    %35 = vector.broadcast %cst_14 : f32 to vector<16x128xf32>
    %36 = arith.mulf %35, %34 : vector<16x128xf32>
    %cst_15 = arith.constant 0.138776854 : f32
    %37 = vector.broadcast %cst_15 : f32 to vector<16x128xf32>
    %38 = arith.subf %36, %37 : vector<16x128xf32>
    %39 = arith.mulf %38, %34 : vector<16x128xf32>
    %cst_16 = arith.constant 0.199777111 : f32
    %40 = vector.broadcast %cst_16 : f32 to vector<16x128xf32>
    %41 = arith.addf %39, %40 : vector<16x128xf32>
    %42 = arith.mulf %41, %34 : vector<16x128xf32>
    %cst_17 = arith.constant 0.333329499 : f32
    %43 = vector.broadcast %cst_17 : f32 to vector<16x128xf32>
    %44 = arith.subf %42, %43 : vector<16x128xf32>
    %45 = arith.mulf %44, %34 : vector<16x128xf32>
    %46 = arith.mulf %45, %28 : vector<16x128xf32>
    %47 = arith.addf %46, %28 : vector<16x128xf32>
    %48 = arith.addf %33, %47 : vector<16x128xf32>
    %cst_18 = arith.constant 0.000000e+00 : f32
    %49 = vector.broadcast %cst_18 : f32 to vector<16x128xf32>
    %50 = arith.cmpf olt, %10, %49 : vector<16x128xf32>
    %cst_19 = arith.constant 0.000000e+00 : f32
    %51 = vector.broadcast %cst_19 : f32 to vector<16x128xf32>
    %52 = arith.subf %51, %48 : vector<16x128xf32>
    %53 = arith.select %50, %52, %48 : vector<16x128xi1>, vector<16x128xf32>
    %cst_20 = arith.constant 0.000000e+00 : f32
    %54 = vector.broadcast %cst_20 : f32 to vector<16x128xf32>
    %55 = arith.cmpf olt, %0, %54 : vector<16x128xf32>
    %cst_21 = arith.constant 0.000000e+00 : f32
    %56 = vector.broadcast %cst_21 : f32 to vector<16x128xf32>
    %57 = arith.cmpf olt, %1, %56 : vector<16x128xf32>
    %cst_22 = arith.constant 3.14159274 : f32
    %58 = vector.broadcast %cst_22 : f32 to vector<16x128xf32>
    %59 = arith.subf %53, %58 : vector<16x128xf32>
    %cst_23 = arith.constant 3.14159274 : f32
    %60 = vector.broadcast %cst_23 : f32 to vector<16x128xf32>
    %61 = arith.addf %53, %60 : vector<16x128xf32>
    %62 = arith.select %57, %59, %61 : vector<16x128xi1>, vector<16x128xf32>
    %63 = arith.select %55, %62, %53 : vector<16x128xi1>, vector<16x128xf32>
    %cst_24 = arith.constant 0.000000e+00 : f32
    %64 = vector.broadcast %cst_24 : f32 to vector<16x128xf32>
    %65 = arith.cmpf oeq, %0, %64 : vector<16x128xf32>
    %cst_25 = arith.constant 0.000000e+00 : f32
    %66 = vector.broadcast %cst_25 : f32 to vector<16x128xf32>
    %67 = arith.cmpf ogt, %1, %66 : vector<16x128xf32>
    %cst_26 = arith.constant 0.000000e+00 : f32
    %68 = vector.broadcast %cst_26 : f32 to vector<16x128xf32>
    %69 = arith.cmpf olt, %1, %68 : vector<16x128xf32>
    %cst_27 = arith.constant -1.57079637 : f32
    %cst_28 = arith.constant 0.000000e+00 : f32
    %70 = vector.broadcast %cst_27 : f32 to vector<16x128xf32>
    %71 = vector.broadcast %cst_28 : f32 to vector<16x128xf32>
    %72 = arith.select %69, %70, %71 : vector<16x128xi1>, vector<16x128xf32>
    %cst_29 = arith.constant 1.57079637 : f32
    %73 = vector.broadcast %cst_29 : f32 to vector<16x128xf32>
    %74 = arith.select %67, %73, %72 : vector<16x128xi1>, vector<16x128xf32>
    %75 = arith.select %65, %74, %63 : vector<16x128xi1>, vector<16x128xf32>
    %cst_30 = arith.constant 0.000000e+00 : f32
    %76 = vector.broadcast %cst_30 : f32 to vector<16x128xf32>
    %c0_31 = arith.constant 0 : index
    %77 = memref.load %arg3[%c0_31] : memref<32xf32, #tpu.memory_space<smem>>
    %78 = vector.broadcast %77 : f32 to vector<16x128xf32>
    %79 = arith.mulf %78, %5 : vector<16x128xf32>
    %c0_32 = arith.constant 0 : index
    %80 = memref.load %arg4[%c0_32] : memref<32xf32, #tpu.memory_space<smem>>
    %81 = vector.broadcast %80 : f32 to vector<16x128xf32>
    %82 = arith.mulf %81, %75 : vector<16x128xf32>
    %83 = arith.addf %79, %82 : vector<16x128xf32>
    %c0_33 = arith.constant 0 : index
    %84 = memref.load %arg5[%c0_33] : memref<32xf32, #tpu.memory_space<smem>>
    %85 = vector.broadcast %84 : f32 to vector<16x128xf32>
    %86 = arith.addf %83, %85 : vector<16x128xf32>
    %87 = math.tanh %86 : vector<16x128xf32>
    %c0_34 = arith.constant 0 : index
    %88 = memref.load %arg6[%c0_34] : memref<32xf32, #tpu.memory_space<smem>>
    %89 = vector.broadcast %88 : f32 to vector<16x128xf32>
    %90 = arith.mulf %89, %87 : vector<16x128xf32>
    %91 = arith.addf %76, %90 : vector<16x128xf32>
    %c1 = arith.constant 1 : index
    %92 = memref.load %arg3[%c1] : memref<32xf32, #tpu.memory_space<smem>>
    %93 = vector.broadcast %92 : f32 to vector<16x128xf32>
    %94 = arith.mulf %93, %5 : vector<16x128xf32>
    %c1_35 = arith.constant 1 : index
    %95 = memref.load %arg4[%c1_35] : memref<32xf32, #tpu.memory_space<smem>>
    %96 = vector.broadcast %95 : f32 to vector<16x128xf32>
    %97 = arith.mulf %96, %75 : vector<16x128xf32>
    %98 = arith.addf %94, %97 : vector<16x128xf32>
    %c1_36 = arith.constant 1 : index
    %99 = memref.load %arg5[%c1_36] : memref<32xf32, #tpu.memory_space<smem>>
    %100 = vector.broadcast %99 : f32 to vector<16x128xf32>
    %101 = arith.addf %98, %100 : vector<16x128xf32>
    %102 = math.tanh %101 : vector<16x128xf32>
    %c1_37 = arith.constant 1 : index
    %103 = memref.load %arg6[%c1_37] : memref<32xf32, #tpu.memory_space<smem>>
    %104 = vector.broadcast %103 : f32 to vector<16x128xf32>
    %105 = arith.mulf %104, %102 : vector<16x128xf32>
    %106 = arith.addf %91, %105 : vector<16x128xf32>
    %c2 = arith.constant 2 : index
    %107 = memref.load %arg3[%c2] : memref<32xf32, #tpu.memory_space<smem>>
    %108 = vector.broadcast %107 : f32 to vector<16x128xf32>
    %109 = arith.mulf %108, %5 : vector<16x128xf32>
    %c2_38 = arith.constant 2 : index
    %110 = memref.load %arg4[%c2_38] : memref<32xf32, #tpu.memory_space<smem>>
    %111 = vector.broadcast %110 : f32 to vector<16x128xf32>
    %112 = arith.mulf %111, %75 : vector<16x128xf32>
    %113 = arith.addf %109, %112 : vector<16x128xf32>
    %c2_39 = arith.constant 2 : index
    %114 = memref.load %arg5[%c2_39] : memref<32xf32, #tpu.memory_space<smem>>
    %115 = vector.broadcast %114 : f32 to vector<16x128xf32>
    %116 = arith.addf %113, %115 : vector<16x128xf32>
    %117 = math.tanh %116 : vector<16x128xf32>
    %c2_40 = arith.constant 2 : index
    %118 = memref.load %arg6[%c2_40] : memref<32xf32, #tpu.memory_space<smem>>
    %119 = vector.broadcast %118 : f32 to vector<16x128xf32>
    %120 = arith.mulf %119, %117 : vector<16x128xf32>
    %121 = arith.addf %106, %120 : vector<16x128xf32>
    %c3 = arith.constant 3 : index
    %122 = memref.load %arg3[%c3] : memref<32xf32, #tpu.memory_space<smem>>
    %123 = vector.broadcast %122 : f32 to vector<16x128xf32>
    %124 = arith.mulf %123, %5 : vector<16x128xf32>
    %c3_41 = arith.constant 3 : index
    %125 = memref.load %arg4[%c3_41] : memref<32xf32, #tpu.memory_space<smem>>
    %126 = vector.broadcast %125 : f32 to vector<16x128xf32>
    %127 = arith.mulf %126, %75 : vector<16x128xf32>
    %128 = arith.addf %124, %127 : vector<16x128xf32>
    %c3_42 = arith.constant 3 : index
    %129 = memref.load %arg5[%c3_42] : memref<32xf32, #tpu.memory_space<smem>>
    %130 = vector.broadcast %129 : f32 to vector<16x128xf32>
    %131 = arith.addf %128, %130 : vector<16x128xf32>
    %132 = math.tanh %131 : vector<16x128xf32>
    %c3_43 = arith.constant 3 : index
    %133 = memref.load %arg6[%c3_43] : memref<32xf32, #tpu.memory_space<smem>>
    %134 = vector.broadcast %133 : f32 to vector<16x128xf32>
    %135 = arith.mulf %134, %132 : vector<16x128xf32>
    %136 = arith.addf %121, %135 : vector<16x128xf32>
    %c4 = arith.constant 4 : index
    %137 = memref.load %arg3[%c4] : memref<32xf32, #tpu.memory_space<smem>>
    %138 = vector.broadcast %137 : f32 to vector<16x128xf32>
    %139 = arith.mulf %138, %5 : vector<16x128xf32>
    %c4_44 = arith.constant 4 : index
    %140 = memref.load %arg4[%c4_44] : memref<32xf32, #tpu.memory_space<smem>>
    %141 = vector.broadcast %140 : f32 to vector<16x128xf32>
    %142 = arith.mulf %141, %75 : vector<16x128xf32>
    %143 = arith.addf %139, %142 : vector<16x128xf32>
    %c4_45 = arith.constant 4 : index
    %144 = memref.load %arg5[%c4_45] : memref<32xf32, #tpu.memory_space<smem>>
    %145 = vector.broadcast %144 : f32 to vector<16x128xf32>
    %146 = arith.addf %143, %145 : vector<16x128xf32>
    %147 = math.tanh %146 : vector<16x128xf32>
    %c4_46 = arith.constant 4 : index
    %148 = memref.load %arg6[%c4_46] : memref<32xf32, #tpu.memory_space<smem>>
    %149 = vector.broadcast %148 : f32 to vector<16x128xf32>
    %150 = arith.mulf %149, %147 : vector<16x128xf32>
    %151 = arith.addf %136, %150 : vector<16x128xf32>
    %c5 = arith.constant 5 : index
    %152 = memref.load %arg3[%c5] : memref<32xf32, #tpu.memory_space<smem>>
    %153 = vector.broadcast %152 : f32 to vector<16x128xf32>
    %154 = arith.mulf %153, %5 : vector<16x128xf32>
    %c5_47 = arith.constant 5 : index
    %155 = memref.load %arg4[%c5_47] : memref<32xf32, #tpu.memory_space<smem>>
    %156 = vector.broadcast %155 : f32 to vector<16x128xf32>
    %157 = arith.mulf %156, %75 : vector<16x128xf32>
    %158 = arith.addf %154, %157 : vector<16x128xf32>
    %c5_48 = arith.constant 5 : index
    %159 = memref.load %arg5[%c5_48] : memref<32xf32, #tpu.memory_space<smem>>
    %160 = vector.broadcast %159 : f32 to vector<16x128xf32>
    %161 = arith.addf %158, %160 : vector<16x128xf32>
    %162 = math.tanh %161 : vector<16x128xf32>
    %c5_49 = arith.constant 5 : index
    %163 = memref.load %arg6[%c5_49] : memref<32xf32, #tpu.memory_space<smem>>
    %164 = vector.broadcast %163 : f32 to vector<16x128xf32>
    %165 = arith.mulf %164, %162 : vector<16x128xf32>
    %166 = arith.addf %151, %165 : vector<16x128xf32>
    %c6 = arith.constant 6 : index
    %167 = memref.load %arg3[%c6] : memref<32xf32, #tpu.memory_space<smem>>
    %168 = vector.broadcast %167 : f32 to vector<16x128xf32>
    %169 = arith.mulf %168, %5 : vector<16x128xf32>
    %c6_50 = arith.constant 6 : index
    %170 = memref.load %arg4[%c6_50] : memref<32xf32, #tpu.memory_space<smem>>
    %171 = vector.broadcast %170 : f32 to vector<16x128xf32>
    %172 = arith.mulf %171, %75 : vector<16x128xf32>
    %173 = arith.addf %169, %172 : vector<16x128xf32>
    %c6_51 = arith.constant 6 : index
    %174 = memref.load %arg5[%c6_51] : memref<32xf32, #tpu.memory_space<smem>>
    %175 = vector.broadcast %174 : f32 to vector<16x128xf32>
    %176 = arith.addf %173, %175 : vector<16x128xf32>
    %177 = math.tanh %176 : vector<16x128xf32>
    %c6_52 = arith.constant 6 : index
    %178 = memref.load %arg6[%c6_52] : memref<32xf32, #tpu.memory_space<smem>>
    %179 = vector.broadcast %178 : f32 to vector<16x128xf32>
    %180 = arith.mulf %179, %177 : vector<16x128xf32>
    %181 = arith.addf %166, %180 : vector<16x128xf32>
    %c7 = arith.constant 7 : index
    %182 = memref.load %arg3[%c7] : memref<32xf32, #tpu.memory_space<smem>>
    %183 = vector.broadcast %182 : f32 to vector<16x128xf32>
    %184 = arith.mulf %183, %5 : vector<16x128xf32>
    %c7_53 = arith.constant 7 : index
    %185 = memref.load %arg4[%c7_53] : memref<32xf32, #tpu.memory_space<smem>>
    %186 = vector.broadcast %185 : f32 to vector<16x128xf32>
    %187 = arith.mulf %186, %75 : vector<16x128xf32>
    %188 = arith.addf %184, %187 : vector<16x128xf32>
    %c7_54 = arith.constant 7 : index
    %189 = memref.load %arg5[%c7_54] : memref<32xf32, #tpu.memory_space<smem>>
    %190 = vector.broadcast %189 : f32 to vector<16x128xf32>
    %191 = arith.addf %188, %190 : vector<16x128xf32>
    %192 = math.tanh %191 : vector<16x128xf32>
    %c7_55 = arith.constant 7 : index
    %193 = memref.load %arg6[%c7_55] : memref<32xf32, #tpu.memory_space<smem>>
    %194 = vector.broadcast %193 : f32 to vector<16x128xf32>
    %195 = arith.mulf %194, %192 : vector<16x128xf32>
    %196 = arith.addf %181, %195 : vector<16x128xf32>
    %c8 = arith.constant 8 : index
    %197 = memref.load %arg3[%c8] : memref<32xf32, #tpu.memory_space<smem>>
    %198 = vector.broadcast %197 : f32 to vector<16x128xf32>
    %199 = arith.mulf %198, %5 : vector<16x128xf32>
    %c8_56 = arith.constant 8 : index
    %200 = memref.load %arg4[%c8_56] : memref<32xf32, #tpu.memory_space<smem>>
    %201 = vector.broadcast %200 : f32 to vector<16x128xf32>
    %202 = arith.mulf %201, %75 : vector<16x128xf32>
    %203 = arith.addf %199, %202 : vector<16x128xf32>
    %c8_57 = arith.constant 8 : index
    %204 = memref.load %arg5[%c8_57] : memref<32xf32, #tpu.memory_space<smem>>
    %205 = vector.broadcast %204 : f32 to vector<16x128xf32>
    %206 = arith.addf %203, %205 : vector<16x128xf32>
    %207 = math.tanh %206 : vector<16x128xf32>
    %c8_58 = arith.constant 8 : index
    %208 = memref.load %arg6[%c8_58] : memref<32xf32, #tpu.memory_space<smem>>
    %209 = vector.broadcast %208 : f32 to vector<16x128xf32>
    %210 = arith.mulf %209, %207 : vector<16x128xf32>
    %211 = arith.addf %196, %210 : vector<16x128xf32>
    %c9 = arith.constant 9 : index
    %212 = memref.load %arg3[%c9] : memref<32xf32, #tpu.memory_space<smem>>
    %213 = vector.broadcast %212 : f32 to vector<16x128xf32>
    %214 = arith.mulf %213, %5 : vector<16x128xf32>
    %c9_59 = arith.constant 9 : index
    %215 = memref.load %arg4[%c9_59] : memref<32xf32, #tpu.memory_space<smem>>
    %216 = vector.broadcast %215 : f32 to vector<16x128xf32>
    %217 = arith.mulf %216, %75 : vector<16x128xf32>
    %218 = arith.addf %214, %217 : vector<16x128xf32>
    %c9_60 = arith.constant 9 : index
    %219 = memref.load %arg5[%c9_60] : memref<32xf32, #tpu.memory_space<smem>>
    %220 = vector.broadcast %219 : f32 to vector<16x128xf32>
    %221 = arith.addf %218, %220 : vector<16x128xf32>
    %222 = math.tanh %221 : vector<16x128xf32>
    %c9_61 = arith.constant 9 : index
    %223 = memref.load %arg6[%c9_61] : memref<32xf32, #tpu.memory_space<smem>>
    %224 = vector.broadcast %223 : f32 to vector<16x128xf32>
    %225 = arith.mulf %224, %222 : vector<16x128xf32>
    %226 = arith.addf %211, %225 : vector<16x128xf32>
    %c10 = arith.constant 10 : index
    %227 = memref.load %arg3[%c10] : memref<32xf32, #tpu.memory_space<smem>>
    %228 = vector.broadcast %227 : f32 to vector<16x128xf32>
    %229 = arith.mulf %228, %5 : vector<16x128xf32>
    %c10_62 = arith.constant 10 : index
    %230 = memref.load %arg4[%c10_62] : memref<32xf32, #tpu.memory_space<smem>>
    %231 = vector.broadcast %230 : f32 to vector<16x128xf32>
    %232 = arith.mulf %231, %75 : vector<16x128xf32>
    %233 = arith.addf %229, %232 : vector<16x128xf32>
    %c10_63 = arith.constant 10 : index
    %234 = memref.load %arg5[%c10_63] : memref<32xf32, #tpu.memory_space<smem>>
    %235 = vector.broadcast %234 : f32 to vector<16x128xf32>
    %236 = arith.addf %233, %235 : vector<16x128xf32>
    %237 = math.tanh %236 : vector<16x128xf32>
    %c10_64 = arith.constant 10 : index
    %238 = memref.load %arg6[%c10_64] : memref<32xf32, #tpu.memory_space<smem>>
    %239 = vector.broadcast %238 : f32 to vector<16x128xf32>
    %240 = arith.mulf %239, %237 : vector<16x128xf32>
    %241 = arith.addf %226, %240 : vector<16x128xf32>
    %c11 = arith.constant 11 : index
    %242 = memref.load %arg3[%c11] : memref<32xf32, #tpu.memory_space<smem>>
    %243 = vector.broadcast %242 : f32 to vector<16x128xf32>
    %244 = arith.mulf %243, %5 : vector<16x128xf32>
    %c11_65 = arith.constant 11 : index
    %245 = memref.load %arg4[%c11_65] : memref<32xf32, #tpu.memory_space<smem>>
    %246 = vector.broadcast %245 : f32 to vector<16x128xf32>
    %247 = arith.mulf %246, %75 : vector<16x128xf32>
    %248 = arith.addf %244, %247 : vector<16x128xf32>
    %c11_66 = arith.constant 11 : index
    %249 = memref.load %arg5[%c11_66] : memref<32xf32, #tpu.memory_space<smem>>
    %250 = vector.broadcast %249 : f32 to vector<16x128xf32>
    %251 = arith.addf %248, %250 : vector<16x128xf32>
    %252 = math.tanh %251 : vector<16x128xf32>
    %c11_67 = arith.constant 11 : index
    %253 = memref.load %arg6[%c11_67] : memref<32xf32, #tpu.memory_space<smem>>
    %254 = vector.broadcast %253 : f32 to vector<16x128xf32>
    %255 = arith.mulf %254, %252 : vector<16x128xf32>
    %256 = arith.addf %241, %255 : vector<16x128xf32>
    %c12 = arith.constant 12 : index
    %257 = memref.load %arg3[%c12] : memref<32xf32, #tpu.memory_space<smem>>
    %258 = vector.broadcast %257 : f32 to vector<16x128xf32>
    %259 = arith.mulf %258, %5 : vector<16x128xf32>
    %c12_68 = arith.constant 12 : index
    %260 = memref.load %arg4[%c12_68] : memref<32xf32, #tpu.memory_space<smem>>
    %261 = vector.broadcast %260 : f32 to vector<16x128xf32>
    %262 = arith.mulf %261, %75 : vector<16x128xf32>
    %263 = arith.addf %259, %262 : vector<16x128xf32>
    %c12_69 = arith.constant 12 : index
    %264 = memref.load %arg5[%c12_69] : memref<32xf32, #tpu.memory_space<smem>>
    %265 = vector.broadcast %264 : f32 to vector<16x128xf32>
    %266 = arith.addf %263, %265 : vector<16x128xf32>
    %267 = math.tanh %266 : vector<16x128xf32>
    %c12_70 = arith.constant 12 : index
    %268 = memref.load %arg6[%c12_70] : memref<32xf32, #tpu.memory_space<smem>>
    %269 = vector.broadcast %268 : f32 to vector<16x128xf32>
    %270 = arith.mulf %269, %267 : vector<16x128xf32>
    %271 = arith.addf %256, %270 : vector<16x128xf32>
    %c13 = arith.constant 13 : index
    %272 = memref.load %arg3[%c13] : memref<32xf32, #tpu.memory_space<smem>>
    %273 = vector.broadcast %272 : f32 to vector<16x128xf32>
    %274 = arith.mulf %273, %5 : vector<16x128xf32>
    %c13_71 = arith.constant 13 : index
    %275 = memref.load %arg4[%c13_71] : memref<32xf32, #tpu.memory_space<smem>>
    %276 = vector.broadcast %275 : f32 to vector<16x128xf32>
    %277 = arith.mulf %276, %75 : vector<16x128xf32>
    %278 = arith.addf %274, %277 : vector<16x128xf32>
    %c13_72 = arith.constant 13 : index
    %279 = memref.load %arg5[%c13_72] : memref<32xf32, #tpu.memory_space<smem>>
    %280 = vector.broadcast %279 : f32 to vector<16x128xf32>
    %281 = arith.addf %278, %280 : vector<16x128xf32>
    %282 = math.tanh %281 : vector<16x128xf32>
    %c13_73 = arith.constant 13 : index
    %283 = memref.load %arg6[%c13_73] : memref<32xf32, #tpu.memory_space<smem>>
    %284 = vector.broadcast %283 : f32 to vector<16x128xf32>
    %285 = arith.mulf %284, %282 : vector<16x128xf32>
    %286 = arith.addf %271, %285 : vector<16x128xf32>
    %c14 = arith.constant 14 : index
    %287 = memref.load %arg3[%c14] : memref<32xf32, #tpu.memory_space<smem>>
    %288 = vector.broadcast %287 : f32 to vector<16x128xf32>
    %289 = arith.mulf %288, %5 : vector<16x128xf32>
    %c14_74 = arith.constant 14 : index
    %290 = memref.load %arg4[%c14_74] : memref<32xf32, #tpu.memory_space<smem>>
    %291 = vector.broadcast %290 : f32 to vector<16x128xf32>
    %292 = arith.mulf %291, %75 : vector<16x128xf32>
    %293 = arith.addf %289, %292 : vector<16x128xf32>
    %c14_75 = arith.constant 14 : index
    %294 = memref.load %arg5[%c14_75] : memref<32xf32, #tpu.memory_space<smem>>
    %295 = vector.broadcast %294 : f32 to vector<16x128xf32>
    %296 = arith.addf %293, %295 : vector<16x128xf32>
    %297 = math.tanh %296 : vector<16x128xf32>
    %c14_76 = arith.constant 14 : index
    %298 = memref.load %arg6[%c14_76] : memref<32xf32, #tpu.memory_space<smem>>
    %299 = vector.broadcast %298 : f32 to vector<16x128xf32>
    %300 = arith.mulf %299, %297 : vector<16x128xf32>
    %301 = arith.addf %286, %300 : vector<16x128xf32>
    %c15 = arith.constant 15 : index
    %302 = memref.load %arg3[%c15] : memref<32xf32, #tpu.memory_space<smem>>
    %303 = vector.broadcast %302 : f32 to vector<16x128xf32>
    %304 = arith.mulf %303, %5 : vector<16x128xf32>
    %c15_77 = arith.constant 15 : index
    %305 = memref.load %arg4[%c15_77] : memref<32xf32, #tpu.memory_space<smem>>
    %306 = vector.broadcast %305 : f32 to vector<16x128xf32>
    %307 = arith.mulf %306, %75 : vector<16x128xf32>
    %308 = arith.addf %304, %307 : vector<16x128xf32>
    %c15_78 = arith.constant 15 : index
    %309 = memref.load %arg5[%c15_78] : memref<32xf32, #tpu.memory_space<smem>>
    %310 = vector.broadcast %309 : f32 to vector<16x128xf32>
    %311 = arith.addf %308, %310 : vector<16x128xf32>
    %312 = math.tanh %311 : vector<16x128xf32>
    %c15_79 = arith.constant 15 : index
    %313 = memref.load %arg6[%c15_79] : memref<32xf32, #tpu.memory_space<smem>>
    %314 = vector.broadcast %313 : f32 to vector<16x128xf32>
    %315 = arith.mulf %314, %312 : vector<16x128xf32>
    %316 = arith.addf %301, %315 : vector<16x128xf32>
    %c16 = arith.constant 16 : index
    %317 = memref.load %arg3[%c16] : memref<32xf32, #tpu.memory_space<smem>>
    %318 = vector.broadcast %317 : f32 to vector<16x128xf32>
    %319 = arith.mulf %318, %5 : vector<16x128xf32>
    %c16_80 = arith.constant 16 : index
    %320 = memref.load %arg4[%c16_80] : memref<32xf32, #tpu.memory_space<smem>>
    %321 = vector.broadcast %320 : f32 to vector<16x128xf32>
    %322 = arith.mulf %321, %75 : vector<16x128xf32>
    %323 = arith.addf %319, %322 : vector<16x128xf32>
    %c16_81 = arith.constant 16 : index
    %324 = memref.load %arg5[%c16_81] : memref<32xf32, #tpu.memory_space<smem>>
    %325 = vector.broadcast %324 : f32 to vector<16x128xf32>
    %326 = arith.addf %323, %325 : vector<16x128xf32>
    %327 = math.tanh %326 : vector<16x128xf32>
    %c16_82 = arith.constant 16 : index
    %328 = memref.load %arg6[%c16_82] : memref<32xf32, #tpu.memory_space<smem>>
    %329 = vector.broadcast %328 : f32 to vector<16x128xf32>
    %330 = arith.mulf %329, %327 : vector<16x128xf32>
    %331 = arith.addf %316, %330 : vector<16x128xf32>
    %c17 = arith.constant 17 : index
    %332 = memref.load %arg3[%c17] : memref<32xf32, #tpu.memory_space<smem>>
    %333 = vector.broadcast %332 : f32 to vector<16x128xf32>
    %334 = arith.mulf %333, %5 : vector<16x128xf32>
    %c17_83 = arith.constant 17 : index
    %335 = memref.load %arg4[%c17_83] : memref<32xf32, #tpu.memory_space<smem>>
    %336 = vector.broadcast %335 : f32 to vector<16x128xf32>
    %337 = arith.mulf %336, %75 : vector<16x128xf32>
    %338 = arith.addf %334, %337 : vector<16x128xf32>
    %c17_84 = arith.constant 17 : index
    %339 = memref.load %arg5[%c17_84] : memref<32xf32, #tpu.memory_space<smem>>
    %340 = vector.broadcast %339 : f32 to vector<16x128xf32>
    %341 = arith.addf %338, %340 : vector<16x128xf32>
    %342 = math.tanh %341 : vector<16x128xf32>
    %c17_85 = arith.constant 17 : index
    %343 = memref.load %arg6[%c17_85] : memref<32xf32, #tpu.memory_space<smem>>
    %344 = vector.broadcast %343 : f32 to vector<16x128xf32>
    %345 = arith.mulf %344, %342 : vector<16x128xf32>
    %346 = arith.addf %331, %345 : vector<16x128xf32>
    %c18 = arith.constant 18 : index
    %347 = memref.load %arg3[%c18] : memref<32xf32, #tpu.memory_space<smem>>
    %348 = vector.broadcast %347 : f32 to vector<16x128xf32>
    %349 = arith.mulf %348, %5 : vector<16x128xf32>
    %c18_86 = arith.constant 18 : index
    %350 = memref.load %arg4[%c18_86] : memref<32xf32, #tpu.memory_space<smem>>
    %351 = vector.broadcast %350 : f32 to vector<16x128xf32>
    %352 = arith.mulf %351, %75 : vector<16x128xf32>
    %353 = arith.addf %349, %352 : vector<16x128xf32>
    %c18_87 = arith.constant 18 : index
    %354 = memref.load %arg5[%c18_87] : memref<32xf32, #tpu.memory_space<smem>>
    %355 = vector.broadcast %354 : f32 to vector<16x128xf32>
    %356 = arith.addf %353, %355 : vector<16x128xf32>
    %357 = math.tanh %356 : vector<16x128xf32>
    %c18_88 = arith.constant 18 : index
    %358 = memref.load %arg6[%c18_88] : memref<32xf32, #tpu.memory_space<smem>>
    %359 = vector.broadcast %358 : f32 to vector<16x128xf32>
    %360 = arith.mulf %359, %357 : vector<16x128xf32>
    %361 = arith.addf %346, %360 : vector<16x128xf32>
    %c19 = arith.constant 19 : index
    %362 = memref.load %arg3[%c19] : memref<32xf32, #tpu.memory_space<smem>>
    %363 = vector.broadcast %362 : f32 to vector<16x128xf32>
    %364 = arith.mulf %363, %5 : vector<16x128xf32>
    %c19_89 = arith.constant 19 : index
    %365 = memref.load %arg4[%c19_89] : memref<32xf32, #tpu.memory_space<smem>>
    %366 = vector.broadcast %365 : f32 to vector<16x128xf32>
    %367 = arith.mulf %366, %75 : vector<16x128xf32>
    %368 = arith.addf %364, %367 : vector<16x128xf32>
    %c19_90 = arith.constant 19 : index
    %369 = memref.load %arg5[%c19_90] : memref<32xf32, #tpu.memory_space<smem>>
    %370 = vector.broadcast %369 : f32 to vector<16x128xf32>
    %371 = arith.addf %368, %370 : vector<16x128xf32>
    %372 = math.tanh %371 : vector<16x128xf32>
    %c19_91 = arith.constant 19 : index
    %373 = memref.load %arg6[%c19_91] : memref<32xf32, #tpu.memory_space<smem>>
    %374 = vector.broadcast %373 : f32 to vector<16x128xf32>
    %375 = arith.mulf %374, %372 : vector<16x128xf32>
    %376 = arith.addf %361, %375 : vector<16x128xf32>
    %c20 = arith.constant 20 : index
    %377 = memref.load %arg3[%c20] : memref<32xf32, #tpu.memory_space<smem>>
    %378 = vector.broadcast %377 : f32 to vector<16x128xf32>
    %379 = arith.mulf %378, %5 : vector<16x128xf32>
    %c20_92 = arith.constant 20 : index
    %380 = memref.load %arg4[%c20_92] : memref<32xf32, #tpu.memory_space<smem>>
    %381 = vector.broadcast %380 : f32 to vector<16x128xf32>
    %382 = arith.mulf %381, %75 : vector<16x128xf32>
    %383 = arith.addf %379, %382 : vector<16x128xf32>
    %c20_93 = arith.constant 20 : index
    %384 = memref.load %arg5[%c20_93] : memref<32xf32, #tpu.memory_space<smem>>
    %385 = vector.broadcast %384 : f32 to vector<16x128xf32>
    %386 = arith.addf %383, %385 : vector<16x128xf32>
    %387 = math.tanh %386 : vector<16x128xf32>
    %c20_94 = arith.constant 20 : index
    %388 = memref.load %arg6[%c20_94] : memref<32xf32, #tpu.memory_space<smem>>
    %389 = vector.broadcast %388 : f32 to vector<16x128xf32>
    %390 = arith.mulf %389, %387 : vector<16x128xf32>
    %391 = arith.addf %376, %390 : vector<16x128xf32>
    %c21 = arith.constant 21 : index
    %392 = memref.load %arg3[%c21] : memref<32xf32, #tpu.memory_space<smem>>
    %393 = vector.broadcast %392 : f32 to vector<16x128xf32>
    %394 = arith.mulf %393, %5 : vector<16x128xf32>
    %c21_95 = arith.constant 21 : index
    %395 = memref.load %arg4[%c21_95] : memref<32xf32, #tpu.memory_space<smem>>
    %396 = vector.broadcast %395 : f32 to vector<16x128xf32>
    %397 = arith.mulf %396, %75 : vector<16x128xf32>
    %398 = arith.addf %394, %397 : vector<16x128xf32>
    %c21_96 = arith.constant 21 : index
    %399 = memref.load %arg5[%c21_96] : memref<32xf32, #tpu.memory_space<smem>>
    %400 = vector.broadcast %399 : f32 to vector<16x128xf32>
    %401 = arith.addf %398, %400 : vector<16x128xf32>
    %402 = math.tanh %401 : vector<16x128xf32>
    %c21_97 = arith.constant 21 : index
    %403 = memref.load %arg6[%c21_97] : memref<32xf32, #tpu.memory_space<smem>>
    %404 = vector.broadcast %403 : f32 to vector<16x128xf32>
    %405 = arith.mulf %404, %402 : vector<16x128xf32>
    %406 = arith.addf %391, %405 : vector<16x128xf32>
    %c22 = arith.constant 22 : index
    %407 = memref.load %arg3[%c22] : memref<32xf32, #tpu.memory_space<smem>>
    %408 = vector.broadcast %407 : f32 to vector<16x128xf32>
    %409 = arith.mulf %408, %5 : vector<16x128xf32>
    %c22_98 = arith.constant 22 : index
    %410 = memref.load %arg4[%c22_98] : memref<32xf32, #tpu.memory_space<smem>>
    %411 = vector.broadcast %410 : f32 to vector<16x128xf32>
    %412 = arith.mulf %411, %75 : vector<16x128xf32>
    %413 = arith.addf %409, %412 : vector<16x128xf32>
    %c22_99 = arith.constant 22 : index
    %414 = memref.load %arg5[%c22_99] : memref<32xf32, #tpu.memory_space<smem>>
    %415 = vector.broadcast %414 : f32 to vector<16x128xf32>
    %416 = arith.addf %413, %415 : vector<16x128xf32>
    %417 = math.tanh %416 : vector<16x128xf32>
    %c22_100 = arith.constant 22 : index
    %418 = memref.load %arg6[%c22_100] : memref<32xf32, #tpu.memory_space<smem>>
    %419 = vector.broadcast %418 : f32 to vector<16x128xf32>
    %420 = arith.mulf %419, %417 : vector<16x128xf32>
    %421 = arith.addf %406, %420 : vector<16x128xf32>
    %c23 = arith.constant 23 : index
    %422 = memref.load %arg3[%c23] : memref<32xf32, #tpu.memory_space<smem>>
    %423 = vector.broadcast %422 : f32 to vector<16x128xf32>
    %424 = arith.mulf %423, %5 : vector<16x128xf32>
    %c23_101 = arith.constant 23 : index
    %425 = memref.load %arg4[%c23_101] : memref<32xf32, #tpu.memory_space<smem>>
    %426 = vector.broadcast %425 : f32 to vector<16x128xf32>
    %427 = arith.mulf %426, %75 : vector<16x128xf32>
    %428 = arith.addf %424, %427 : vector<16x128xf32>
    %c23_102 = arith.constant 23 : index
    %429 = memref.load %arg5[%c23_102] : memref<32xf32, #tpu.memory_space<smem>>
    %430 = vector.broadcast %429 : f32 to vector<16x128xf32>
    %431 = arith.addf %428, %430 : vector<16x128xf32>
    %432 = math.tanh %431 : vector<16x128xf32>
    %c23_103 = arith.constant 23 : index
    %433 = memref.load %arg6[%c23_103] : memref<32xf32, #tpu.memory_space<smem>>
    %434 = vector.broadcast %433 : f32 to vector<16x128xf32>
    %435 = arith.mulf %434, %432 : vector<16x128xf32>
    %436 = arith.addf %421, %435 : vector<16x128xf32>
    %c24 = arith.constant 24 : index
    %437 = memref.load %arg3[%c24] : memref<32xf32, #tpu.memory_space<smem>>
    %438 = vector.broadcast %437 : f32 to vector<16x128xf32>
    %439 = arith.mulf %438, %5 : vector<16x128xf32>
    %c24_104 = arith.constant 24 : index
    %440 = memref.load %arg4[%c24_104] : memref<32xf32, #tpu.memory_space<smem>>
    %441 = vector.broadcast %440 : f32 to vector<16x128xf32>
    %442 = arith.mulf %441, %75 : vector<16x128xf32>
    %443 = arith.addf %439, %442 : vector<16x128xf32>
    %c24_105 = arith.constant 24 : index
    %444 = memref.load %arg5[%c24_105] : memref<32xf32, #tpu.memory_space<smem>>
    %445 = vector.broadcast %444 : f32 to vector<16x128xf32>
    %446 = arith.addf %443, %445 : vector<16x128xf32>
    %447 = math.tanh %446 : vector<16x128xf32>
    %c24_106 = arith.constant 24 : index
    %448 = memref.load %arg6[%c24_106] : memref<32xf32, #tpu.memory_space<smem>>
    %449 = vector.broadcast %448 : f32 to vector<16x128xf32>
    %450 = arith.mulf %449, %447 : vector<16x128xf32>
    %451 = arith.addf %436, %450 : vector<16x128xf32>
    %c25 = arith.constant 25 : index
    %452 = memref.load %arg3[%c25] : memref<32xf32, #tpu.memory_space<smem>>
    %453 = vector.broadcast %452 : f32 to vector<16x128xf32>
    %454 = arith.mulf %453, %5 : vector<16x128xf32>
    %c25_107 = arith.constant 25 : index
    %455 = memref.load %arg4[%c25_107] : memref<32xf32, #tpu.memory_space<smem>>
    %456 = vector.broadcast %455 : f32 to vector<16x128xf32>
    %457 = arith.mulf %456, %75 : vector<16x128xf32>
    %458 = arith.addf %454, %457 : vector<16x128xf32>
    %c25_108 = arith.constant 25 : index
    %459 = memref.load %arg5[%c25_108] : memref<32xf32, #tpu.memory_space<smem>>
    %460 = vector.broadcast %459 : f32 to vector<16x128xf32>
    %461 = arith.addf %458, %460 : vector<16x128xf32>
    %462 = math.tanh %461 : vector<16x128xf32>
    %c25_109 = arith.constant 25 : index
    %463 = memref.load %arg6[%c25_109] : memref<32xf32, #tpu.memory_space<smem>>
    %464 = vector.broadcast %463 : f32 to vector<16x128xf32>
    %465 = arith.mulf %464, %462 : vector<16x128xf32>
    %466 = arith.addf %451, %465 : vector<16x128xf32>
    %c26 = arith.constant 26 : index
    %467 = memref.load %arg3[%c26] : memref<32xf32, #tpu.memory_space<smem>>
    %468 = vector.broadcast %467 : f32 to vector<16x128xf32>
    %469 = arith.mulf %468, %5 : vector<16x128xf32>
    %c26_110 = arith.constant 26 : index
    %470 = memref.load %arg4[%c26_110] : memref<32xf32, #tpu.memory_space<smem>>
    %471 = vector.broadcast %470 : f32 to vector<16x128xf32>
    %472 = arith.mulf %471, %75 : vector<16x128xf32>
    %473 = arith.addf %469, %472 : vector<16x128xf32>
    %c26_111 = arith.constant 26 : index
    %474 = memref.load %arg5[%c26_111] : memref<32xf32, #tpu.memory_space<smem>>
    %475 = vector.broadcast %474 : f32 to vector<16x128xf32>
    %476 = arith.addf %473, %475 : vector<16x128xf32>
    %477 = math.tanh %476 : vector<16x128xf32>
    %c26_112 = arith.constant 26 : index
    %478 = memref.load %arg6[%c26_112] : memref<32xf32, #tpu.memory_space<smem>>
    %479 = vector.broadcast %478 : f32 to vector<16x128xf32>
    %480 = arith.mulf %479, %477 : vector<16x128xf32>
    %481 = arith.addf %466, %480 : vector<16x128xf32>
    %c27 = arith.constant 27 : index
    %482 = memref.load %arg3[%c27] : memref<32xf32, #tpu.memory_space<smem>>
    %483 = vector.broadcast %482 : f32 to vector<16x128xf32>
    %484 = arith.mulf %483, %5 : vector<16x128xf32>
    %c27_113 = arith.constant 27 : index
    %485 = memref.load %arg4[%c27_113] : memref<32xf32, #tpu.memory_space<smem>>
    %486 = vector.broadcast %485 : f32 to vector<16x128xf32>
    %487 = arith.mulf %486, %75 : vector<16x128xf32>
    %488 = arith.addf %484, %487 : vector<16x128xf32>
    %c27_114 = arith.constant 27 : index
    %489 = memref.load %arg5[%c27_114] : memref<32xf32, #tpu.memory_space<smem>>
    %490 = vector.broadcast %489 : f32 to vector<16x128xf32>
    %491 = arith.addf %488, %490 : vector<16x128xf32>
    %492 = math.tanh %491 : vector<16x128xf32>
    %c27_115 = arith.constant 27 : index
    %493 = memref.load %arg6[%c27_115] : memref<32xf32, #tpu.memory_space<smem>>
    %494 = vector.broadcast %493 : f32 to vector<16x128xf32>
    %495 = arith.mulf %494, %492 : vector<16x128xf32>
    %496 = arith.addf %481, %495 : vector<16x128xf32>
    %c28 = arith.constant 28 : index
    %497 = memref.load %arg3[%c28] : memref<32xf32, #tpu.memory_space<smem>>
    %498 = vector.broadcast %497 : f32 to vector<16x128xf32>
    %499 = arith.mulf %498, %5 : vector<16x128xf32>
    %c28_116 = arith.constant 28 : index
    %500 = memref.load %arg4[%c28_116] : memref<32xf32, #tpu.memory_space<smem>>
    %501 = vector.broadcast %500 : f32 to vector<16x128xf32>
    %502 = arith.mulf %501, %75 : vector<16x128xf32>
    %503 = arith.addf %499, %502 : vector<16x128xf32>
    %c28_117 = arith.constant 28 : index
    %504 = memref.load %arg5[%c28_117] : memref<32xf32, #tpu.memory_space<smem>>
    %505 = vector.broadcast %504 : f32 to vector<16x128xf32>
    %506 = arith.addf %503, %505 : vector<16x128xf32>
    %507 = math.tanh %506 : vector<16x128xf32>
    %c28_118 = arith.constant 28 : index
    %508 = memref.load %arg6[%c28_118] : memref<32xf32, #tpu.memory_space<smem>>
    %509 = vector.broadcast %508 : f32 to vector<16x128xf32>
    %510 = arith.mulf %509, %507 : vector<16x128xf32>
    %511 = arith.addf %496, %510 : vector<16x128xf32>
    %c29 = arith.constant 29 : index
    %512 = memref.load %arg3[%c29] : memref<32xf32, #tpu.memory_space<smem>>
    %513 = vector.broadcast %512 : f32 to vector<16x128xf32>
    %514 = arith.mulf %513, %5 : vector<16x128xf32>
    %c29_119 = arith.constant 29 : index
    %515 = memref.load %arg4[%c29_119] : memref<32xf32, #tpu.memory_space<smem>>
    %516 = vector.broadcast %515 : f32 to vector<16x128xf32>
    %517 = arith.mulf %516, %75 : vector<16x128xf32>
    %518 = arith.addf %514, %517 : vector<16x128xf32>
    %c29_120 = arith.constant 29 : index
    %519 = memref.load %arg5[%c29_120] : memref<32xf32, #tpu.memory_space<smem>>
    %520 = vector.broadcast %519 : f32 to vector<16x128xf32>
    %521 = arith.addf %518, %520 : vector<16x128xf32>
    %522 = math.tanh %521 : vector<16x128xf32>
    %c29_121 = arith.constant 29 : index
    %523 = memref.load %arg6[%c29_121] : memref<32xf32, #tpu.memory_space<smem>>
    %524 = vector.broadcast %523 : f32 to vector<16x128xf32>
    %525 = arith.mulf %524, %522 : vector<16x128xf32>
    %526 = arith.addf %511, %525 : vector<16x128xf32>
    %c30 = arith.constant 30 : index
    %527 = memref.load %arg3[%c30] : memref<32xf32, #tpu.memory_space<smem>>
    %528 = vector.broadcast %527 : f32 to vector<16x128xf32>
    %529 = arith.mulf %528, %5 : vector<16x128xf32>
    %c30_122 = arith.constant 30 : index
    %530 = memref.load %arg4[%c30_122] : memref<32xf32, #tpu.memory_space<smem>>
    %531 = vector.broadcast %530 : f32 to vector<16x128xf32>
    %532 = arith.mulf %531, %75 : vector<16x128xf32>
    %533 = arith.addf %529, %532 : vector<16x128xf32>
    %c30_123 = arith.constant 30 : index
    %534 = memref.load %arg5[%c30_123] : memref<32xf32, #tpu.memory_space<smem>>
    %535 = vector.broadcast %534 : f32 to vector<16x128xf32>
    %536 = arith.addf %533, %535 : vector<16x128xf32>
    %537 = math.tanh %536 : vector<16x128xf32>
    %c30_124 = arith.constant 30 : index
    %538 = memref.load %arg6[%c30_124] : memref<32xf32, #tpu.memory_space<smem>>
    %539 = vector.broadcast %538 : f32 to vector<16x128xf32>
    %540 = arith.mulf %539, %537 : vector<16x128xf32>
    %541 = arith.addf %526, %540 : vector<16x128xf32>
    %c31 = arith.constant 31 : index
    %542 = memref.load %arg3[%c31] : memref<32xf32, #tpu.memory_space<smem>>
    %543 = vector.broadcast %542 : f32 to vector<16x128xf32>
    %544 = arith.mulf %543, %5 : vector<16x128xf32>
    %c31_125 = arith.constant 31 : index
    %545 = memref.load %arg4[%c31_125] : memref<32xf32, #tpu.memory_space<smem>>
    %546 = vector.broadcast %545 : f32 to vector<16x128xf32>
    %547 = arith.mulf %546, %75 : vector<16x128xf32>
    %548 = arith.addf %544, %547 : vector<16x128xf32>
    %c31_126 = arith.constant 31 : index
    %549 = memref.load %arg5[%c31_126] : memref<32xf32, #tpu.memory_space<smem>>
    %550 = vector.broadcast %549 : f32 to vector<16x128xf32>
    %551 = arith.addf %548, %550 : vector<16x128xf32>
    %552 = math.tanh %551 : vector<16x128xf32>
    %c31_127 = arith.constant 31 : index
    %553 = memref.load %arg6[%c31_127] : memref<32xf32, #tpu.memory_space<smem>>
    %554 = vector.broadcast %553 : f32 to vector<16x128xf32>
    %555 = arith.mulf %554, %552 : vector<16x128xf32>
    %556 = arith.addf %541, %555 : vector<16x128xf32>
    %c0_128 = arith.constant 0 : index
    %557 = memref.load %arg7[%c0_128] : memref<1xf32, #tpu.memory_space<smem>>
    %558 = vector.broadcast %557 : f32 to vector<16x128xf32>
    %559 = arith.addf %556, %558 : vector<16x128xf32>
    %560 = arith.negf %559 : vector<16x128xf32>
    %561 = math.exp %560 : vector<16x128xf32>
    %cst_129 = arith.constant 1.000000e+00 : f32
    %562 = vector.broadcast %cst_129 : f32 to vector<16x128xf32>
    %563 = arith.addf %562, %561 : vector<16x128xf32>
    %564 = arith.divf %562, %563 : vector<16x128xf32>
    %c0_130 = arith.constant 0 : index
    %c0_131 = arith.constant 0 : index
    %565 = vector.load %arg8[%c0_130, %c0_131] : memref<16x128xf32, #tpu.memory_space<vmem>>, vector<16x128xf32>
    tpu.vector_store %arg8[%c0_130, %c0_131], %564 {strides = array<i32>} : memref<16x128xf32, #tpu.memory_space<vmem>>, vector<16x128xf32>,
    return
  }
  func.func @transform_0(%arg0: i32) -> (i32, i32) {
    %c0_i32 = arith.constant 0 : i32
    %c0_i32_0 = arith.constant 0 : i32
    return %arg0, %c0_i32 : i32, i32
  }
  func.func @transform_1(%arg0: i32) -> (i32, i32) {
    %c0_i32 = arith.constant 0 : i32
    %c0_i32_0 = arith.constant 0 : i32
    return %arg0, %c0_i32 : i32, i32
  }
  func.func @transform_2(%arg0: i32) -> i32 {
    %c0_i32 = arith.constant 0 : i32
    %c0_i32_0 = arith.constant 0 : i32
    return %c0_i32 : i32
  }
  func.func @transform_3(%arg0: i32) -> i32 {
    %c0_i32 = arith.constant 0 : i32
    %c0_i32_0 = arith.constant 0 : i32
    return %c0_i32 : i32
  }
  func.func @transform_4(%arg0: i32) -> i32 {
    %c0_i32 = arith.constant 0 : i32
    %c0_i32_0 = arith.constant 0 : i32
    return %c0_i32 : i32
  }
  func.func @transform_5(%arg0: i32) -> i32 {
    %c0_i32 = arith.constant 0 : i32
    %c0_i32_0 = arith.constant 0 : i32
    return %c0_i32 : i32
  }
  func.func @transform_6(%arg0: i32) -> i32 {
    %c0_i32 = arith.constant 0 : i32
    %c0_i32_0 = arith.constant 0 : i32
    return %c0_i32 : i32
  }
  func.func @transform_7(%arg0: i32) -> (i32, i32) {
    %c0_i32 = arith.constant 0 : i32
    %c0_i32_0 = arith.constant 0 : i32
    return %arg0, %c0_i32 : i32, i32
  }
}

</mosaic_0001>

<bundles_post_ra>
// kernel: tpu_custom_call.1
= control target key start
LH: loop header
LB: loop body
LE: loop exit
PB: predicated region body
PF: predicated region fallthrough
CT: control target
= control target key end

     0   :  { %s2412_s0 = inlined_call_operand.hbm [shape: f32[16,128], index: 0, kind: input, shape index: {}]   ;;  %s2413_s1 = inlined_call_operand.hbm [shape: f32[16,128], index: 1, kind: input, shape index: {}]   ;;  %s2414_s2 = inlined_call_operand.vmem [shape: f32[32], index: 2, kind: input, shape index: {}]   ;;  %s2415_s3 = inlined_call_operand.vmem [shape: f32[32], index: 3, kind: input, shape index: {}]   ;;  %s2416_s4 = inlined_call_operand.vmem [shape: f32[32], index: 4, kind: input, shape index: {}]   ;;  %s2417_s5 = inlined_call_operand.vmem [shape: f32[32], index: 5, kind: input, shape index: {}]   ;;  %s2418_s6 = inlined_call_operand.<no memory space> [shape: f32[1], index: 6, kind: input, shape index: {}]   ;;  %s2419_s7 = inlined_call_operand.hbm [shape: f32[16,128], index: 7, kind: output, shape index: {}]  }
   0x1   :  { %2462 = sst [smem:[#allocation42_spill]] %s2418_s6 }
   0x2   :  { %2463 = sst [smem:[#allocation43_spill]] %s2419_s7 }
   0x3   :  { %13 = vsyncpa [#allocation4], 0 }
   0x4   :  { %14 = vsyncpa [#allocation8], 0 }
   0x5   :  { %15 = vsyncpa [#allocation6], 0 }
   0x6   :  { %16 = vsyncpa [#allocation11], 0 }
   0x7   :  { %17 = vsyncpa [#allocation14], 0  ;;  %s59_s26 = sshll.u32 %s2415_s3, 4  ;;  %s60_s26 = int_to_ptr.vmem [resolvable:$true] %s59_s26 }
   0x8   :  { %18 = vsyncpa [#allocation5], 0  ;;  %s1253_s27 = scalar_lea.vmem %s60_s26, 16  ;;  %p1258_p1 = scmp.lt.s32.totalorder %s60_s26, %s60_s26 }
   0x9   :  { %p1254_p0 = scmp.ne.s32.totalorder %s60_s26, %s1253_s27  ;;  %p1259_p2 = scmp.lt.s32.totalorder %s1253_s27, %s1253_s27 }
   0xb   :  { %p1260_p3 = por %p1259_p2, %p1258_p1 }
   0xd   :  { %p1261_p4 = pnand %p1260_p3, %p1254_p0 }
   0xf   :  { %1264 = shalt.err (!%p1261_p4)
}
  0x10   :  { %s1373_s28 = smov [#allocation10]   ;;  %s1374_s29 = smov [#allocation3]  }
  0x11   :  { %62 = dma.vmem_to_smem %s60_s26, 16, %s1373_s28, [#allocation11]  }
  0x12   :  { %s24_s30 = sshll.u32 %s1374_s29, 4  ;;  %s25_s30 = int_to_ptr.vmem [resolvable:$true] %s24_s30 }
  0x13   :  { %s1273_s8 = scalar_lea.vmem %s25_s30, 256  ;;  %p1278_p6 = scmp.lt.s32.totalorder %s25_s30, %s25_s30 }
  0x14   :  { %p1274_p5 = scmp.ne.s32.totalorder %s25_s30, %s1273_s8  ;;  %p1279_p7 = scmp.lt.s32.totalorder %s1273_s8, %s1273_s8 }
  0x16   :  { %p1280_p8 = por %p1279_p7, %p1278_p6 }
  0x18   :  { %p1281_p9 = pnand %p1280_p8, %p1274_p5 }
  0x1a   :  { %1284 = shalt.err (!%p1281_p9)
}
  0x1b   :  { %s2420_s3 = smov 128   ;;  %s2421_s9 = smov 8  }
  0x1c   :  { %30 = dma.hbm_to_vmem [thread:$0]  %s2412_s0, 256, %s25_s30, [#allocation4], %s2420_s3, %s2420_s3, %s2421_s9  }
  0x1d   :  { %s49_s14 = sshll.u32 %s2414_s2, 4  ;;  %s1377_s15 = smov [#allocation7]   ;;  %s50_s14 = int_to_ptr.vmem [resolvable:$true] %s49_s14 }
  0x1e   :  { %s36_s16 = sshll.u32 %s1377_s15, 4  ;;  %s37_s16 = int_to_ptr.vmem [resolvable:$true] %s36_s16 }
  0x1f   :  { %s1293_s17 = scalar_lea.vmem %s37_s16, 256  ;;  %p1298_p11 = scmp.lt.s32.totalorder %s37_s16, %s37_s16 }
  0x20   :  { %p1294_p10 = scmp.ne.s32.totalorder %s37_s16, %s1293_s17  ;;  %p1299_p12 = scmp.lt.s32.totalorder %s1293_s17, %s1293_s17 }
  0x22   :  { %p1300_p13 = por %p1299_p12, %p1298_p11 }
  0x24   :  { %p1301_p0 = pnand %p1300_p13, %p1294_p10 }
  0x26   :  { %1304 = shalt.err (!%p1301_p0)
}
  0x27   :  { %42 = dma.hbm_to_vmem [thread:$0]  %s2413_s1, 256, %s37_s16, [#allocation8], %s2420_s3, %s2420_s3, %s2421_s9  }
  0x28   :  { %s1305_s19 = scalar_lea.vmem %s50_s14, 16  ;;  %p1310_p2 = scmp.lt.s32.totalorder %s50_s14, %s50_s14 }
  0x29   :  { %p1306_p1 = scmp.ne.s32.totalorder %s50_s14, %s1305_s19  ;;  %p1311_p3 = scmp.lt.s32.totalorder %s1305_s19, %s1305_s19 }
  0x2b   :  { %p1312_p4 = por %p1311_p3, %p1310_p2 }
  0x2d   :  { %p1313_p5 = pnand %p1312_p4, %p1306_p1 }
  0x2f   :  { %1316 = shalt.err (!%p1313_p5)
}
  0x30   :  { %s1378_s2 = smov [#allocation9]   ;;  %s69_s22 = sshll.u32 %s2416_s4, 4  ;;  %s70_s22 = int_to_ptr.vmem [resolvable:$true] %s69_s22 }
  0x31   :  { %52 = dma.vmem_to_smem %s50_s14, 16, %s1378_s2, [#allocation6]  }
  0x32   :  { %s79_s25 = sshll.u32 %s2417_s5, 4  ;;  %s1317_s26 = scalar_lea.vmem %s70_s22, 16  ;;  %s80_s25 = int_to_ptr.vmem [resolvable:$true] %s79_s25 }
  0x33   :  { %p1318_p6 = scmp.ne.s32.totalorder %s70_s22, %s1317_s26  ;;  %p1322_p7 = scmp.lt.s32.totalorder %s70_s22, %s70_s22 }
  0x34   :  { %p1323_p8 = scmp.lt.s32.totalorder %s1317_s26, %s1317_s26 }
  0x36   :  { %p1324_p9 = por %p1323_p8, %p1322_p7 }
  0x38   :  { %p1325_p10 = pnand %p1324_p9, %p1318_p6 }
  0x3a   :  { %1328 = shalt.err (!%p1325_p10)
}
  0x3b   :  { %s1379_s1 = smov [#allocation12]   ;;  %s1329_s27 = scalar_lea.vmem %s80_s25, 16 }
  0x3c   :  { %72 = dma.vmem_to_smem %s70_s22, 16, %s1379_s1, [#allocation11]  }
  0x3d   :  { %p1330_p11 = scmp.ne.s32.totalorder %s80_s25, %s1329_s27  ;;  %p1334_p12 = scmp.lt.s32.totalorder %s80_s25, %s80_s25 }
  0x3e   :  { %p1335_p13 = scmp.lt.s32.totalorder %s1329_s27, %s1329_s27 }
  0x40   :  { %p1336_p0 = por %p1335_p13, %p1334_p12 }
  0x42   :  { %p1337_p1 = pnand %p1336_p0, %p1330_p11 }
  0x44   :  { %1340 = shalt.err (!%p1337_p1)
}
  0x45   :  { %s1380_s4 = smov [#allocation13]  }
  0x46   :  { %82 = dma.vmem_to_smem %s80_s25, 16, %s1380_s4, [#allocation14]  }
  0x47   :  { %1361 = dma.done.wait [#allocation4], 256  }
  0x48   :  { %1362 = vsyncadd [#allocation4], 4294967040 }
  0x49   :  { %1363 = dma.done.wait [#allocation8], 256  }
  0x4a   :  { %1364 = vsyncadd [#allocation8], 4294967040 }
  0x4b   :  { %1365 = dma.done.wait [#allocation6], 16  }
  0x4c   :  { %1366 = vsyncadd [#allocation6], 4294967280 }
  0x4d   :  { %1367 = dma.done.wait [#allocation11], 32  }
  0x4e   :  { %1368 = vsyncadd [#allocation11], 4294967264 }
  0x4f   :  { %1369 = dma.done.wait [#allocation14], 16  }
  0x50   :  { %1370 = vsyncadd [#allocation14], 4294967280 }
  0x51   :  { %103 = sfence }
  0x52   :  { %v1447_v0 = vld [vmem:[#allocation3] sm:$0xff]  ;;  %v1449_v1 = vld [vmem:[#allocation3 + $0x8] sm:$0xff]  ;;  %s1459_s5 = sld [smem:[#allocation9]]  ;;  %v1469_v4 = vld [vmem:[#allocation7] sm:$0xff]  ;;  %v1381_v23 = vmov 0.0  }
  0x53   :  { %vm128_vm0 = vcmp.eq.f32.partialorder %v1447_v0, 0.0  ;;  %vm129_vm1 = vcmp.eq.f32.partialorder %v1449_v1, 0.0  ;;  %s1461_s28 = sld [smem:[#allocation10]]  ;;  %v1473_v5 = vld [vmem:[#allocation7 + $0x8] sm:$0xff]  ;;  %v108_v6 = vmul.f32 %v1447_v0, %v1447_v0  ;;  %v110_v7 = vmul.f32 %v1469_v4, %v1469_v4 }
  0x54   :  { %v130_v2 = vsel %vm128_vm0, 1.0, %v1447_v0  ;;  %v131_v3 = vsel %vm129_vm1, 1.0, %v1449_v1  ;;  %s1463_s29 = sld [smem:[#allocation12]]  ;;  %v109_v8 = vmul.f32 %v1449_v1, %v1449_v1  ;;  %v111_v9 = vmul.f32 %v1473_v5, %v1473_v5 }
  0x55   :  { %1101 = vrcp.f32 %v130_v2  ;;  %s1465_s30 = sld [smem:[#allocation13]]  ;;  %v1491_v10 = vadd.f32 %v110_v7, %v108_v6  ;;  %vm196_vm4 = vcmp.lt.f32.partialorder %v1469_v4, 0.0  ;;  %vm197_vm5 = vcmp.lt.f32.partialorder %v1473_v5, 0.0 }
  0x56   :  { %1103 = vrcp.f32 %v131_v3  ;;  %s1467_s8 = sld [smem:[#allocation9 + $0x1]]  ;;  %v1495_v12 = vadd.f32 %v111_v9, %v109_v8  ;;  %vm206_vm6 = vcmp.gt.f32.partialorder %v1469_v4, 0.0  ;;  %vm207_vm7 = vcmp.gt.f32.partialorder %v1473_v5, 0.0 }
  0x57   :  { %s1471_s10 = sld [smem:[#allocation10 + $0x1]]  ;;  %1105 = vrsqrt.f32 %v1491_v10  ;;  %v208_v24 = vsel %vm196_vm4, -1.5707964, %v1381_v23  ;;  %v209_v25 = vsel %vm197_vm5, -1.5707964, %v1381_v23  ;;  %vm116_vm8 = vcmp.eq.f32.partialorder %v1491_v10, inf }
  0x58   :  { %s1479_s11 = sld [smem:[#allocation12 + $0x1]]  ;;  %1107 = vrsqrt.f32 %v1495_v12  ;;  %vm118_vm9 = vcmp.eq.f32.partialorder %v1491_v10, 0.0  ;;  %v119_v27 = vand.u32 2147483648, %v1491_v10  ;;  %vm123_vm10 = vcmp.eq.f32.partialorder %v1495_v12, inf }
  0x59   :  { %s1485_s12 = sld [smem:[#allocation13 + $0x1]]  ;;  %vm125_vm11 = vcmp.eq.f32.partialorder %v1495_v12, 0.0  ;;  %v126_v28 = vand.u32 2147483648, %v1495_v12  ;;  %v1572_v30 = vsel %vm206_vm6, 1.5707964, %v208_v24  ;;  %v215_v34 = vstv %s1459_s5 }
  0x5a   :  { %2464 = sst [smem:[#allocation22_spill]] %s1463_s29  ;;  %v1576_v31 = vsel %vm207_vm7, 1.5707964, %v209_v25  ;;  %v219_v35 = vstv %s1461_s28  ;;  %v225_v38 = vstv %s1463_s29  ;;  %vm194_vm6 = vcmp.lt.f32.partialorder %v1447_v0, 0.0 }
  0x5b   :  { %2465 = sst [smem:[#allocation23_spill]] %s1465_s30  ;;  %vm195_vm7 = vcmp.lt.f32.partialorder %v1449_v1, 0.0 }
  0x5c   :  { %s1487_s13 = sld [smem:[#allocation9 + $0x2]]  ;;  %v237_v40 = vstv %s1467_s8 }
  0x5d   :  { %s1489_s14 = sld [smem:[#allocation10 + $0x2]]  ;;  %v241_v42 = vstv %s1471_s10 }
  0x5e   :  { %2466 = sst [smem:[#allocation24_spill]] %s1479_s11  ;;  %v247_v43 = vstv %s1479_s11 }
  0x5f   :  { %2467 = sst [smem:[#allocation25_spill]] %s1485_s12 }
  0x60   :  { %s1493_s15 = sld [smem:[#allocation12 + $0x2]] }
  0x61   :  { %s1497_s16 = sld [smem:[#allocation13 + $0x2]] }
  0x62   :  { %v1102_v11 = vpop.eup %1101  ;;  %s1502_s17 = sld [smem:[#allocation9 + $0x3]]  ;;  %v259_v48 = vstv %s1487_s13 }
  0x63   :  { %v1104_v13 = vpop.eup %1103  ;;  %v1500_v14 = vmul.f32 %v1102_v11, %v1469_v4  ;;  %s1507_s18 = sld [smem:[#allocation10 + $0x3]]  ;;  %v263_v54 = vstv %s1489_s14 }
  0x64   :  { %v1505_v15 = vmul.f32 %v1104_v13, %v1473_v5  ;;  %s1513_s0 = sld [smem:[#allocation12 + $0x3]]  ;;  %v1106_v22 = vpop.eup %1105 }
  0x65   :  { %v1511_v16 = vand.u32 2147483647, %v1500_v14  ;;  %s1519_s19 = sld [smem:[#allocation13 + $0x3]]  ;;  %v1108_v26 = vpop.eup %1107  ;;  %v115_v29 = vmul.f32 %v1106_v22, %v1491_v10 }
  0x66   :  { %2468 = sst [smem:[#allocation26_spill]] %s1493_s15  ;;  %v1517_v17 = vand.u32 2147483647, %v1505_v15  ;;  %v122_v32 = vmul.f32 %v1108_v26, %v1495_v12  ;;  %v269_v55 = vstv %s1493_s15 }
  0x67   :  { %2469 = sst [smem:[#allocation27_spill]] %s1497_s16  ;;  %vm142_vm2 = vcmp.eq.f32.partialorder %v1511_v16, 0.0  ;;  %v152_v20 = vadd.f32 1.0, %v1511_v16  ;;  %v957_v33 = vadd.f32 -1.0, %v1511_v16  ;;  %vm138_vm12 = vcmp.gt.f32.partialorder %v1511_v16, 2.4142137 }
  0x68   :  { %s1522_s2 = sld [smem:[#allocation9 + $0x4]]  ;;  %vm143_vm3 = vcmp.eq.f32.partialorder %v1517_v17, 0.0  ;;  %v144_v18 = vsel %vm142_vm2, 1.0, %v1511_v16  ;;  %v153_v21 = vadd.f32 1.0, %v1517_v17  ;;  %v958_v37 = vadd.f32 -1.0, %v1517_v17 }
  0x69   :  { %2470 = sst [smem:[#allocation28_spill]] %s1507_s18  ;;  %v145_v19 = vsel %vm143_vm3, 1.0, %v1517_v17  ;;  %1109 = vrcp.f32 %v144_v18  ;;  %v117_v46 = vsel %vm116_vm8, %v1491_v10, %v115_v29  ;;  %vm140_vm13 = vcmp.gt.f32.partialorder %v1511_v16, 0.41421357 }
  0x6a   :  { %2471 = sst [smem:[#allocation29_spill]] %s1513_s0  ;;  %1111 = vrcp.f32 %v145_v19  ;;  %v124_v50 = vsel %vm123_vm10, %v1495_v12, %v122_v32  ;;  %vm141_vm14 = vcmp.gt.f32.partialorder %v1517_v17, 0.41421357  ;;  %vm139_vm15 = vcmp.gt.f32.partialorder %v1517_v17, 2.4142137 }
  0x6b   :  { %2472 = sst [smem:[#allocation30_spill]] %s1519_s19  ;;  %1113 = vrcp.f32 %v152_v20  ;;  %v1618_v56 = vsel %vm118_vm9, %v119_v27, %v117_v46  ;;  %v162_v58 = vsel %vm140_vm13, 0.7853982, %v1381_v23  ;;  %v163_v59 = vsel %vm141_vm14, 0.7853982, %v1381_v23 }
  0x6c   :  { %s1524_s20 = sld [smem:[#allocation10 + $0x4]]  ;;  %1115 = vrcp.f32 %v153_v21  ;;  %v1629_v60 = vsel %vm125_vm11, %v126_v28, %v124_v50  ;;  %v281_v6 = vstv %s1502_s17  ;;  %v285_v7 = vstv %s1507_s18 }
  0x6d   :  { %s1528_s21 = sld [smem:[#allocation12 + $0x4]]  ;;  %v1653_v8 = vsel %vm138_vm12, 1.5707964, %v162_v58  ;;  %v1657_v9 = vsel %vm139_vm15, 1.5707964, %v163_v59  ;;  %v1664_v11 = vmul.f32 %v215_v34, %v1618_v56  ;;  %v1670_v13 = vmul.f32 %v215_v34, %v1629_v60 }
  0x6e   :  { %s1532_s22 = sld [smem:[#allocation13 + $0x4]]  ;;  %v1682_v19 = vmul.f32 %v259_v48, %v1618_v56  ;;  %v1685_v20 = vmul.f32 %v259_v48, %v1629_v60  ;;  %v303_v21 = vstv %s1522_s2  ;;  %v1691_v23 = vmul.f32 %v281_v6, %v1618_v56 }
  0x6f   :  { %s1535_s23 = sld [smem:[#allocation9 + $0x5]]  ;;  %v1694_v24 = vmul.f32 %v281_v6, %v1629_v60  ;;  %v291_v25 = vstv %s1513_s0  ;;  %v1709_v34 = vmul.f32 %v303_v21, %v1629_v60  ;;  %vm188_vm2 = vcmp.lt.f32.partialorder %v1500_v14, 0.0 }
  0x70   :  { %s1537_s24 = sld [smem:[#allocation10 + $0x5]]  ;;  %vm189_vm3 = vcmp.lt.f32.partialorder %v1505_v15, 0.0 }
  0x71   :  { %s1539_s25 = sld [smem:[#allocation12 + $0x5]] }
  0x72   :  { %s1541_s26 = sld [smem:[#allocation13 + $0x5]]  ;;  %v307_v28 = vstv %s1524_s20 }
  0x73   :  { %2473 = sst [smem:[#allocation31_spill]] %s1528_s21 }
  0x74   :  { %2474 = sst [smem:[#allocation32_spill]] %s1532_s22 }
  0x75   :  { %s1545_s1 = sld [smem:[#allocation9 + $0x6]]  ;;  %v325_v29 = vstv %s1535_s23 }
  0x76   :  { %s1547_s27 = sld [smem:[#allocation10 + $0x6]]  ;;  %v1110_v36 = vpop.eup %1109 }
  0x77   :  { %s1551_s4 = sld [smem:[#allocation12 + $0x6]]  ;;  %v1112_v41 = vpop.eup %1111  ;;  %v147_v47 = vmul.f32 -1.0, %v1110_v36 }
  0x78   :  { %2475 = sst [smem:[#allocation33_spill]] %s1541_s26  ;;  %v1114_v45 = vpop.eup %1113  ;;  %v149_v51 = vmul.f32 -1.0, %v1112_v41 }
  0x79   :  { %s1557_s3 = sld [smem:[#allocation13 + $0x6]]  ;;  %v1116_v49 = vpop.eup %1115  ;;  %v155_v52 = vmul.f32 %v1114_v45, %v957_v33  ;;  %v1706_v33 = vmul.f32 %v303_v21, %v1618_v56  ;;  %v329_v45 = vstv %s1537_s24 }
  0x7a   :  { %s1561_s9 = sld [smem:[#allocation9 + $0x7]]  ;;  %v157_v53 = vmul.f32 %v1116_v49, %v958_v37 }
  0x7b   :  { %s1567_s7 = sld [smem:[#allocation10 + $0x7]]  ;;  %v158_v57 = vsel %vm140_vm13, %v155_v52, %v1511_v16  ;;  %v1673_v16 = vmul.f32 %v237_v40, %v1618_v56  ;;  %v347_v36 = vstv %s1545_s1 }
  0x7c   :  { %s1578_s6 = sld [smem:[#allocation12 + $0x7]]  ;;  %v159_v61 = vsel %vm141_vm14, %v157_v53, %v1517_v17  ;;  %v1634_v62 = vsel %vm138_vm12, %v147_v47, %v158_v57  ;;  %v1676_v17 = vmul.f32 %v237_v40, %v1629_v60  ;;  %v1721_v47 = vmul.f32 %v325_v29, %v1618_v56 }
  0x7d   :  { %s1596_s5 = sld [smem:[#allocation10 + $0x8]]  ;;  %v1641_v2 = vsel %vm139_vm15, %v149_v51, %v159_v61  ;;  %v1645_v3 = vmul.f32 %v1634_v62, %v1634_v62  ;;  %v1728_v51 = vmul.f32 %v325_v29, %v1629_v60  ;;  %v1732_v53 = vmul.f32 %v347_v36, %v1618_v56 }
  0x7e   :  { %s1603_s8 = sld [smem:[#allocation12 + $0x8]]  ;;  %v1661_v10 = vmul.f32 %v1641_v2, %v1641_v2  ;;  %v1738_v58 = vmul.f32 %v347_v36, %v1629_v60  ;;  %v351_v59 = vstv %s1547_s27 }
  0x7f   :  { %2476 = sst [smem:[#allocation34_spill]] %s1557_s3  ;;  %v168_v12 = vmul.f32 0.080537446, %v1645_v3 }
  0x80   :  { %s1590_s3 = sld [smem:[#allocation9 + $0x8]]  ;;  %v169_v18 = vmul.f32 0.080537446, %v1661_v10  ;;  %v369_v49 = vstv %s1561_s9 }
  0x81   :  { %2477 = sst [smem:[#allocation35_spill]] %s1567_s7  ;;  %v959_v22 = vadd.f32 -0.13877685, %v168_v12  ;;  %v1748_v21 = vmul.f32 %v369_v49, %v1618_v56 }
  0x82   :  { %s1584_s7 = sld [smem:[#allocation13 + $0x7]]  ;;  %v960_v26 = vadd.f32 -0.13877685, %v169_v18 }
  0x83   :  { %s1609_s12 = sld [smem:[#allocation13 + $0x8]]  ;;  %v172_v32 = vmul.f32 %v959_v22, %v1645_v3 }
  0x84   :  { %s1614_s13 = sld [smem:[#allocation9 + $0x9]]  ;;  %v173_v37 = vmul.f32 %v960_v26, %v1661_v10  ;;  %v1753_v26 = vmul.f32 %v369_v49, %v1629_v60 }
  0x85   :  { %s1625_s30 = sld [smem:[#allocation10 + $0x9]]  ;;  %v174_v46 = vadd.f32 0.19977711, %v172_v32 }
  0x86   :  { %s1637_s15 = sld [smem:[#allocation12 + $0x9]]  ;;  %v175_v50 = vadd.f32 0.19977711, %v173_v37  ;;  %v391_v61 = vstv %s1590_s3 }
  0x87   :  { %s1649_s11 = sld [smem:[#allocation13 + $0x9]]  ;;  %v176_v57 = vmul.f32 %v174_v46, %v1645_v3 }
  0x88   :  { %2478 = sst [smem:[#allocation36_spill]] %s1584_s7  ;;  %v177_v6 = vmul.f32 %v175_v50, %v1661_v10  ;;  %v1763_v50 = vmul.f32 %v391_v61, %v1618_v56 }
  0x89   :  { %2479 = sst [smem:[#allocation37_spill]] %s1609_s12  ;;  %v961_v22 = vadd.f32 -0.3333295, %v176_v57  ;;  %v1770_v57 = vmul.f32 %v391_v61, %v1629_v60 }
  0x8a   :  { %s1666_s17 = sld [smem:[#allocation9 + $0xa]]  ;;  %v413_v32 = vstv %s1614_s13  ;;  %v962_v36 = vadd.f32 -0.3333295, %v177_v6 }
  0x8b   :  { %s1678_s16 = sld [smem:[#allocation10 + $0xa]]  ;;  %v180_v49 = vmul.f32 %v961_v22, %v1645_v3  ;;  %v1780_v27 = vmul.f32 %v413_v32, %v1618_v56  ;;  %v1786_v61 = vmul.f32 %v413_v32, %v1629_v60 }
  0x8c   :  { %s1688_s29 = sld [smem:[#allocation12 + $0xa]]  ;;  %v181_v46 = vmul.f32 %v962_v36, %v1661_v10 }
  0x8d   :  { %2480 = sst [smem:[#allocation38_spill]] %s1649_s11  ;;  %v182_v3 = vmul.f32 %v180_v49, %v1634_v62 }
  0x8e   :  { %s1697_s18 = sld [smem:[#allocation13 + $0xa]]  ;;  %v183_v10 = vmul.f32 %v181_v46, %v1641_v2 }
  0x8f   :  { %s1702_s2 = sld [smem:[#allocation9 + $0xb]]  ;;  %v184_v32 = vadd.f32 %v182_v3, %v1634_v62 }
  0x90   :  { %s1712_s0 = sld [smem:[#allocation10 + $0xb]]  ;;  %v435_v18 = vstv %s1666_s17  ;;  %v185_v41 = vadd.f32 %v183_v10, %v1641_v2 }
  0x91   :  { %s1718_s23 = sld [smem:[#allocation12 + $0xb]]  ;;  %v1797_v44 = vmul.f32 %v435_v18, %v1618_v56  ;;  %v1804_v49 = vmul.f32 %v435_v18, %v1629_v60  ;;  %v186_v62 = vadd.f32 %v184_v32, %v1653_v8 }
  0x92   :  { %s1725_s1 = sld [smem:[#allocation13 + $0xb]]  ;;  %v187_v2 = vadd.f32 %v185_v41, %v1657_v9 }
  0x93   :  { %s2484_s21 = sld [smem:[#allocation35_spill]]  ;;  %v190_v8 = vsub.f32 0.0, %v186_v62 }
  0x94   :  { %2481 = sst [smem:[#allocation39_spill]] %s1697_s18  ;;  %v191_v22 = vsub.f32 0.0, %v187_v2 }
  0x95   :  { %s1734_s22 = sld [smem:[#allocation9 + $0xc]]  ;;  %v457_v63 = vstv %s1702_s2  ;;  %v192_v52 = vsel %vm188_vm2, %v190_v8, %v186_v62 }
  0x96   :  { %s1742_s9 = sld [smem:[#allocation10 + $0xc]]  ;;  %v1814_v37 = vmul.f32 %v457_v63, %v1618_v56  ;;  %v1820_v18 = vmul.f32 %v457_v63, %v1629_v60  ;;  %v193_v6 = vsel %vm189_vm3, %v191_v22, %v187_v2  ;;  %v963_v3 = vadd.f32 -3.1415927, %v192_v52 }
  0x97   :  { %s1750_s26 = sld [smem:[#allocation12 + $0xc]]  ;;  %v200_v32 = vadd.f32 3.1415927, %v192_v52  ;;  %v964_v48 = vadd.f32 -3.1415927, %v193_v6 }
  0x98   :  { %2483 = sst [smem:[#allocation40_spill]] %s1725_s1  ;;  %v201_v40 = vadd.f32 3.1415927, %v193_v6 }
  0x99   :  { %s1757_s3 = sld [smem:[#allocation9 + $0xd]]  ;;  %v202_v15 = vsel %vm196_vm4, %v963_v3, %v200_v32 }
  0x9a   :  { %s1765_s19 = sld [smem:[#allocation13 + $0xc]]  ;;  %v203_v8 = vsel %vm197_vm5, %v964_v48, %v201_v40 }
  0x9b   :  { %s1774_s13 = sld [smem:[#allocation10 + $0xd]]  ;;  %v479_v39 = vstv %s1734_s22  ;;  %v205_v3 = vsel %vm195_vm7, %v203_v8, %v193_v6 }
  0x9c   :  { %s1782_s7 = sld [smem:[#allocation9 + $0xe]]  ;;  %v1830_v36 = vmul.f32 %v479_v39, %v1618_v56  ;;  %v1835_v63 = vmul.f32 %v479_v39, %v1629_v60  ;;  %v1889_v40 = vsel %vm129_vm1, %v1576_v31, %v205_v3 }
  0x9d   :  { %s1790_s17 = sld [smem:[#allocation12 + $0xd]]  ;;  %v243_v1 = vmul.f32 %v241_v42, %v1889_v40  ;;  %v265_v31 = vmul.f32 %v263_v54, %v1889_v40 }
  0x9e   :  { %s1799_s12 = sld [smem:[#allocation10 + $0xe]] }
  0x9f   :  { %s1808_s2 = sld [smem:[#allocation12 + $0xe]]  ;;  %v501_v46 = vstv %s1757_s3 }
  0xa0   :  { %2485 = sst [smem:[#allocation35_spill]] %s1765_s19  ;;  %v1841_v9 = vmul.f32 %v501_v46, %v1618_v56  ;;  %v1849_v10 = vmul.f32 %v501_v46, %v1629_v60 }
  0xa1   :  { %s1816_s11 = sld [smem:[#allocation9 + $0xf]]  ;;  %v505_v39 = vstv %s1774_s13 }
  0xa2   :  { %s1824_s22 = sld [smem:[#allocation10 + $0xf]]  ;;  %v523_v41 = vstv %s1782_s7 }
  0xa3   :  { %s1832_s18 = sld [smem:[#allocation12 + $0xf]]  ;;  %v1857_v14 = vmul.f32 %v523_v41, %v1618_v56  ;;  %v1860_v46 = vmul.f32 %v523_v41, %v1629_v60  ;;  %v204_v41 = vsel %vm194_vm6, %v202_v15, %v192_v52 }
  0xa4   :  { %s1844_s3 = sld [smem:[#allocation9 + $0x10]]  ;;  %v527_v22 = vstv %s1799_s12  ;;  %v1882_v32 = vsel %vm128_vm0, %v1572_v30, %v204_v41  ;;  %v221_v30 = vmul.f32 %v219_v35, %v1889_v40  ;;  %v267_v41 = vadd.f32 %v265_v31, %v1685_v20 }
  0xa5   :  { %v220_v48 = vmul.f32 %v219_v35, %v1882_v32  ;;  %v242_v52 = vmul.f32 %v241_v42, %v1882_v32  ;;  %v264_v0 = vmul.f32 %v263_v54, %v1882_v32  ;;  %v287_v42 = vmul.f32 %v285_v7, %v1889_v40  ;;  %s2492_s28 = sld [smem:[#allocation31_spill]] }
  0xa6   :  { %v223_v8 = vadd.f32 %v221_v30, %v1670_v13  ;;  %v245_v54 = vadd.f32 %v243_v1, %v1676_v17  ;;  %s2520_s10 = sld [smem:[#allocation27_spill]] }
  0xa7   :  { %v545_v12 = vstv %s1816_s11  ;;  %v222_v6 = vadd.f32 %v220_v48, %v1664_v11  ;;  %v244_v15 = vadd.f32 %v242_v52, %v1673_v16  ;;  %v266_v35 = vadd.f32 %v264_v0, %v1682_v19  ;;  %s2525_s14 = sld [smem:[#allocation30_spill]] }
  0xa8   :  { %v1867_v2 = vmul.f32 %v545_v12, %v1618_v56  ;;  %v1874_v29 = vmul.f32 %v545_v12, %v1629_v60  ;;  %v549_v4 = vstv %s1824_s22  ;;  %v286_v12 = vmul.f32 %v285_v7, %v1882_v32  ;;  %s2096_s19 = sld [smem:[#allocation10 + $0x10]] }
  0xa9   :  { %2486 = sst [smem:[#allocation41_spill]] %s1832_s18  ;;  %v555_v62 = vstv %s1832_s18  ;;  %v226_v16 = vadd.f32 %v225_v38, %v222_v6  ;;  %v248_v19 = vadd.f32 %v247_v43, %v244_v15  ;;  %v270_v3 = vadd.f32 %v269_v55, %v266_v35 }
  0xaa   :  { %v567_v5 = vstv %s1844_s3  ;;  %v288_v11 = vadd.f32 %v286_v12, %v1691_v23  ;;  %v289_v7 = vadd.f32 %v287_v42, %v1694_v24  ;;  %v227_v13 = vadd.f32 %v225_v38, %v223_v8  ;;  %s2542_s18 = sld [smem:[#allocation36_spill]] }
  0xab   :  { %v249_v17 = vadd.f32 %v247_v43, %v245_v54  ;;  %v271_v48 = vadd.f32 %v269_v55, %v267_v41  ;;  %1117 = vtanh.f32 %v226_v16  ;;  %v308_v52 = vmul.f32 %v307_v28, %v1882_v32  ;;  %s2100_s12 = sld [smem:[#allocation13 + $0xd]] }
  0xac   :  { %v292_v20 = vadd.f32 %v291_v25, %v288_v11  ;;  %v293_v23 = vadd.f32 %v291_v25, %v289_v7  ;;  %v309_v24 = vmul.f32 %v307_v28, %v1889_v40  ;;  %1119 = vtanh.f32 %v227_v13  ;;  %s2550_s20 = sld [smem:[#allocation38_spill]] }
  0xad   :  { %v330_v38 = vmul.f32 %v329_v45, %v1882_v32  ;;  %v331_v43 = vmul.f32 %v329_v45, %v1889_v40  ;;  %v352_v55 = vmul.f32 %v351_v59, %v1882_v32  ;;  %1121 = vtanh.f32 %v248_v19  ;;  %s2555_s24 = sld [smem:[#allocation39_spill]] }
  0xae   :  { %v310_v25 = vadd.f32 %v308_v52, %v1706_v33  ;;  %v311_v0 = vadd.f32 %v309_v24, %v1709_v34  ;;  %v353_v28 = vmul.f32 %v351_v59, %v1889_v40  ;;  %1123 = vtanh.f32 %v249_v17  ;;  %s2145_s1 = sld [smem:[#allocation9 + $0x12]] }
  0xaf   :  { %v332_v30 = vadd.f32 %v330_v38, %v1721_v47  ;;  %v333_v45 = vadd.f32 %v331_v43, %v1728_v51  ;;  %v354_v1 = vadd.f32 %v352_v55, %v1732_v53  ;;  %1125 = vtanh.f32 %v270_v3  ;;  %s2156_s13 = sld [smem:[#allocation13 + $0xf]] }
  0xb0   :  { %v2493_v33 = vstv %s2492_s28  ;;  %v355_v6 = vadd.f32 %v353_v28, %v1738_v58  ;;  %1127 = vtanh.f32 %v271_v48  ;;  %v2495_v59 = vstv %s1539_s25  ;;  %s2116_s25 = sld [smem:[#allocation12 + $0x10]] }
  0xb1   :  { %v314_v31 = vadd.f32 %v2493_v33, %v310_v25  ;;  %v2494_v12 = vmov %v2493_v33  ;;  %v336_v15 = vadd.f32 %v2495_v59, %v332_v30  ;;  %v2496_v35 = vmov %v2495_v59  ;;  %s2172_s22 = sld [smem:[#allocation12 + $0x12]] }
  0xb2   :  { %v315_v34 = vadd.f32 %v2494_v12, %v311_v0  ;;  %v337_v47 = vadd.f32 %v2496_v35, %v333_v45  ;;  %v2497_v42 = vstv %s1551_s4  ;;  %1129 = vtanh.f32 %v292_v20  ;;  %s2559_s4 = sld [smem:[#allocation40_spill]] }
  0xb3   :  { %v358_v8 = vadd.f32 %v2497_v42, %v354_v1  ;;  %v2498_v51 = vmov %v2497_v42  ;;  %v2499_v53 = vstv %s2484_s21  ;;  %1131 = vtanh.f32 %v293_v23  ;;  %s2107_s21 = sld [smem:[#allocation13 + $0xe]] }
  0xb4   :  { %v359_v54 = vadd.f32 %v2498_v51, %v355_v6  ;;  %v374_v41 = vmul.f32 %v2499_v53, %v1882_v32  ;;  %v2500_v11 = vmov %v2499_v53  ;;  %v2501_v58 = vstv %s1596_s5  ;;  %s2128_s5 = sld [smem:[#allocation10 + $0x11]] }
  0xb5   :  { %v375_v16 = vmul.f32 %v2500_v11, %v1889_v40  ;;  %v396_v19 = vmul.f32 %v2501_v58, %v1882_v32  ;;  %v2502_v3 = vmov %v2501_v58  ;;  %v2503_v13 = vstv %s1625_s30  ;;  %s2507_s30 = sld [smem:[#allocation23_spill]] }
  0xb6   :  { %v397_v7 = vmul.f32 %v2502_v3, %v1889_v40  ;;  %v418_v17 = vmul.f32 %v2503_v13, %v1882_v32  ;;  %1133 = vtanh.f32 %v314_v31  ;;  %v376_v48 = vadd.f32 %v374_v41, %v1748_v21  ;;  %s2176_s3 = sld [smem:[#allocation9 + $0x13]] }
  0xb7   :  { %v377_v20 = vadd.f32 %v375_v16, %v1753_v26  ;;  %v2504_v23 = vmov %v2503_v13  ;;  %1135 = vtanh.f32 %v315_v34  ;;  %v398_v24 = vadd.f32 %v396_v19, %v1763_v50  ;;  %s2180_s7 = sld [smem:[#allocation13 + $0x12]] }
  0xb8   :  { %v419_v52 = vmul.f32 %v2504_v23, %v1889_v40  ;;  %v399_v38 = vadd.f32 %v397_v7, %v1770_v57  ;;  %v420_v43 = vadd.f32 %v418_v17, %v1780_v27  ;;  %1137 = vtanh.f32 %v336_v15  ;;  %v1118_v59 = vpop.eup %1117  ;;  %s2184_s11 = sld [smem:[#allocation10 + $0x13]] }
  0xb9   :  { %v2505_v55 = vstv %s1578_s6  ;;  %1139 = vtanh.f32 %v337_v47  ;;  %v2508_v28 = vstv %s1603_s8  ;;  %v2510_v1 = vstv %s1637_s15  ;;  %s2514_s6 = sld [smem:[#allocation25_spill]]  ;;  %v1120_v51 = vpop.eup %1119 }
  0xba   :  { %v380_v21 = vadd.f32 %v2505_v55, %v376_v48  ;;  %v2506_v25 = vmov %v2505_v55  ;;  %v421_v0 = vadd.f32 %v419_v52, %v1786_v61  ;;  %v402_v30 = vadd.f32 %v2508_v28, %v398_v24  ;;  %v1122_v16 = vpop.eup %1121  ;;  %s2534_s15 = sld [smem:[#allocation33_spill]] }
  0xbb   :  { %v381_v26 = vadd.f32 %v2506_v25, %v377_v20  ;;  %v2509_v45 = vmov %v2508_v28  ;;  %v424_v57 = vadd.f32 %v2510_v1, %v420_v43  ;;  %1141 = vtanh.f32 %v358_v8  ;;  %v1124_v13 = vpop.eup %1123  ;;  %s2136_s8 = sld [smem:[#allocation12 + $0x11]] }
  0xbc   :  { %v403_v50 = vadd.f32 %v2509_v45, %v399_v38  ;;  %v2511_v27 = vmov %v2510_v1  ;;  %v2512_v31 = vstv %s1678_s16  ;;  %1143 = vtanh.f32 %v359_v54  ;;  %s2539_s16 = sld [smem:[#allocation34_spill]] }
  0xbd   :  { %v425_v33 = vadd.f32 %v2511_v27, %v421_v0  ;;  %v440_v12 = vmul.f32 %v2512_v31, %v1882_v32  ;;  %v2513_v34 = vmov %v2512_v31  ;;  %v2515_v61 = vstv %s1712_s0  ;;  %s2546_s0 = sld [smem:[#allocation37_spill]] }
  0xbe   :  { %v441_v6 = vmul.f32 %v2513_v34, %v1889_v40  ;;  %v462_v15 = vmul.f32 %v2515_v61, %v1882_v32  ;;  %v2516_v35 = vmov %v2515_v61  ;;  %v2517_v42 = vstv %s1742_s9  ;;  %s2152_s9 = sld [smem:[#allocation10 + $0x12]] }
  0xbf   :  { %v463_v47 = vmul.f32 %v2516_v35, %v1889_v40  ;;  %v484_v8 = vmul.f32 %v2517_v42, %v1882_v32  ;;  %v2518_v53 = vstv %s2507_s30  ;;  %1145 = vtanh.f32 %v380_v21  ;;  %s2188_s28 = sld [smem:[#allocation12 + $0x13]] }
  0xc0   :  { %v232_v41 = vmul.f32 %v1118_v59, %v2518_v53  ;;  %v442_v11 = vadd.f32 %v440_v12, %v1797_v44  ;;  %v443_v54 = vadd.f32 %v441_v6, %v1804_v49  ;;  %v2519_v58 = vmov %v2518_v53  ;;  %v1126_v49 = vpop.eup %1125  ;;  %s2191_s30 = sld [smem:[#allocation9 + $0x14]] }
  0xc1   :  { %v233_v19 = vmul.f32 %v1120_v51, %v2519_v58  ;;  %1147 = vtanh.f32 %v381_v26  ;;  %v464_v3 = vadd.f32 %v462_v15, %v1814_v37  ;;  %v465_v7 = vadd.f32 %v463_v47, %v1820_v18  ;;  %v1128_v25 = vpop.eup %1127  ;;  %s2256_s27 = sld [smem:[#allocation10 + $0x18]] }
  0xc2   :  { %v2521_v17 = vstv %s2514_s6  ;;  %1149 = vtanh.f32 %v402_v30  ;;  %v2522_v20 = vstv %s1688_s29  ;;  %v2526_v43 = vstv %s1718_s23  ;;  %v1130_v45 = vpop.eup %1129  ;;  %s2531_s29 = sld [smem:[#allocation32_spill]] }
  0xc3   :  { %v254_v48 = vmul.f32 %v1122_v16, %v2521_v17  ;;  %v446_v44 = vadd.f32 %v2522_v20, %v442_v11  ;;  %v2523_v23 = vmov %v2522_v20  ;;  %v2524_v24 = vmov %v2521_v17  ;;  %v1132_v12 = vpop.eup %1131  ;;  %s2562_s23 = sld [smem:[#allocation35_spill]] }
  0xc4   :  { %v447_v52 = vadd.f32 %v2523_v23, %v443_v54  ;;  %v255_v38 = vmul.f32 %v1124_v13, %v2524_v24  ;;  %1151 = vtanh.f32 %v403_v50  ;;  %v468_v55 = vadd.f32 %v2526_v43, %v464_v3  ;;  %v1134_v61 = vpop.eup %1133  ;;  %s2195_s6 = sld [smem:[#allocation10 + $0x14]] }
  0xc5   :  { %v2527_v37 = vmov %v2526_v43  ;;  %v256_v18 = vadd.f32 %v254_v48, %v232_v41  ;;  %v2528_v26 = vstv %s2520_s10  ;;  %1153 = vtanh.f32 %v424_v57  ;;  %v1136_v51 = vpop.eup %1135  ;;  %s2198_s10 = sld [smem:[#allocation12 + $0x14]] }
  0xc6   :  { %v469_v21 = vadd.f32 %v2527_v37, %v465_v7  ;;  %v276_v0 = vmul.f32 %v1126_v49, %v2528_v26  ;;  %v2529_v28 = vmov %v2517_v42  ;;  %v257_v1 = vadd.f32 %v255_v38, %v233_v19  ;;  %v1138_v54 = vpop.eup %1137 }
  0xc7   :  { %v485_v30 = vmul.f32 %v2529_v28, %v1889_v40  ;;  %v2530_v27 = vmov %v2528_v26  ;;  %1155 = vtanh.f32 %v425_v33  ;;  %v486_v50 = vadd.f32 %v484_v8, %v1830_v36  ;;  %v1140_v3 = vpop.eup %1139 }
  0xc8   :  { %v277_v31 = vmul.f32 %v1128_v25, %v2530_v27  ;;  %v278_v34 = vadd.f32 %v276_v0, %v256_v18  ;;  %v2532_v6 = vstv %s2525_s14  ;;  %1157 = vtanh.f32 %v446_v44  ;;  %v1142_v20 = vpop.eup %1141  ;;  %s2203_s14 = sld [smem:[#allocation9 + $0x15]] }
  0xc9   :  { %v298_v59 = vmul.f32 %v1130_v45, %v2532_v6  ;;  %v487_v57 = vadd.f32 %v485_v30, %v1835_v63  ;;  %v2533_v35 = vmov %v2532_v6  ;;  %1159 = vtanh.f32 %v447_v52  ;;  %v1144_v24 = vpop.eup %1143 }
  0xca   :  { %v279_v15 = vadd.f32 %v277_v31, %v257_v1  ;;  %v299_v47 = vmul.f32 %v1132_v12, %v2533_v35  ;;  %v2535_v42 = vstv %s1750_s26  ;;  %v2536_v8 = vstv %s2531_s29  ;;  %s2123_s26 = sld [smem:[#allocation9 + $0x11]] }
  0xcb   :  { %v490_v33 = vadd.f32 %v2535_v42, %v486_v50  ;;  %v300_v36 = vadd.f32 %v298_v59, %v278_v34  ;;  %v320_v53 = vmul.f32 %v1134_v61, %v2536_v8  ;;  %1161 = vtanh.f32 %v468_v55  ;;  %s2206_s29 = sld [smem:[#allocation10 + $0x15]] }
  0xcc   :  { %v2537_v41 = vmov %v2535_v42  ;;  %v301_v16 = vadd.f32 %v299_v47, %v279_v15  ;;  %v2538_v63 = vmov %v2536_v8  ;;  %1163 = vtanh.f32 %v469_v21 }
  0xcd   :  { %v491_v11 = vadd.f32 %v2537_v41, %v487_v57  ;;  %v321_v58 = vmul.f32 %v1136_v51, %v2538_v63  ;;  %v506_v19 = vmul.f32 %v505_v39, %v1882_v32  ;;  %v322_v7 = vadd.f32 %v320_v53, %v300_v36 }
  0xce   :  { %v2540_v13 = vstv %s2534_s15  ;;  %1165 = vtanh.f32 %v490_v33  ;;  %v507_v48 = vmul.f32 %v505_v39, %v1889_v40  ;;  %v2543_v43 = vstv %s2539_s16  ;;  %v1146_v39 = vpop.eup %1145  ;;  %s2211_s15 = sld [smem:[#allocation12 + $0x15]] }
  0xcf   :  { %v342_v17 = vmul.f32 %v1138_v54, %v2540_v13  ;;  %v323_v44 = vadd.f32 %v321_v58, %v301_v16  ;;  %v2541_v23 = vmov %v2540_v13  ;;  %1167 = vtanh.f32 %v491_v11  ;;  %v1148_v30 = vpop.eup %1147  ;;  %s2215_s16 = sld [smem:[#allocation9 + $0x16]] }
  0xd0   :  { %v343_v52 = vmul.f32 %v1140_v3, %v2541_v23  ;;  %v508_v49 = vadd.f32 %v506_v19, %v1841_v9  ;;  %v364_v55 = vmul.f32 %v1142_v20, %v2543_v43  ;;  %v509_v37 = vadd.f32 %v507_v48, %v1849_v10  ;;  %v1150_v12 = vpop.eup %1149 }
  0xd1   :  { %v344_v38 = vadd.f32 %v342_v17, %v322_v7  ;;  %v528_v21 = vmul.f32 %v527_v22, %v1882_v32  ;;  %v2544_v18 = vmov %v2543_v43  ;;  %v2545_v0 = vstv %s1790_s17  ;;  %v1152_v57 = vpop.eup %1151  ;;  %s2162_s17 = sld [smem:[#allocation13 + $0x10]] }
  0xd2   :  { %v345_v25 = vadd.f32 %v343_v52, %v323_v44  ;;  %v365_v26 = vmul.f32 %v1144_v24, %v2544_v18  ;;  %v512_v28 = vadd.f32 %v2545_v0, %v508_v49  ;;  %v529_v9 = vmul.f32 %v527_v22, %v1889_v40  ;;  %v1154_v42 = vpop.eup %1153 }
  0xd3   :  { %v366_v45 = vadd.f32 %v364_v55, %v344_v38  ;;  %v2547_v1 = vstv %s2542_s18  ;;  %v2548_v31 = vmov %v2545_v0  ;;  %v530_v50 = vadd.f32 %v528_v21, %v1857_v14  ;;  %s2220_s18 = sld [smem:[#allocation10 + $0x16]] }
  0xd4   :  { %v386_v27 = vmul.f32 %v1146_v39, %v2547_v1  ;;  %v513_v10 = vadd.f32 %v2548_v31, %v509_v37  ;;  %v367_v34 = vadd.f32 %v365_v26, %v345_v25  ;;  %v2549_v6 = vmov %v2547_v1  ;;  %v1156_v41 = vpop.eup %1155 }
  0xd5   :  { %v387_v59 = vmul.f32 %v1148_v30, %v2549_v6  ;;  %1169 = vtanh.f32 %v512_v28  ;;  %v531_v22 = vadd.f32 %v529_v9, %v1860_v46  ;;  %v2551_v15 = vstv %s2546_s0  ;;  %v1158_v58 = vpop.eup %1157  ;;  %s2223_s0 = sld [smem:[#allocation13 + $0x13]] }
  0xd6   :  { %v388_v61 = vadd.f32 %v386_v27, %v366_v45  ;;  %v408_v14 = vmul.f32 %v1150_v12, %v2551_v15  ;;  %1171 = vtanh.f32 %v513_v10  ;;  %v2552_v35 = vstv %s1808_s2  ;;  %v1160_v17 = vpop.eup %1159  ;;  %s2167_s2 = sld [smem:[#allocation13 + $0x11]] }
  0xd7   :  { %v534_v47 = vadd.f32 %v2552_v35, %v530_v50  ;;  %v389_v33 = vadd.f32 %v387_v59, %v367_v34  ;;  %v2553_v51 = vmov %v2551_v15  ;;  %v2554_v8 = vmov %v2552_v35 }
  0xd8   :  { %v409_v36 = vmul.f32 %v1152_v57, %v2553_v51  ;;  %v535_v53 = vadd.f32 %v2554_v8, %v531_v22  ;;  %v550_v46 = vmul.f32 %v549_v4, %v1882_v32  ;;  %v410_v11 = vadd.f32 %v408_v14, %v388_v61  ;;  %v1162_v52 = vpop.eup %1161 }
  0xd9   :  { %v2556_v54 = vstv %s2550_s20  ;;  %1173 = vtanh.f32 %v534_v47  ;;  %v551_v63 = vmul.f32 %v549_v4, %v1889_v40  ;;  %v2560_v4 = vstv %s2555_s24  ;;  %v1164_v55 = vpop.eup %1163  ;;  %s2237_s20 = sld [smem:[#allocation13 + $0x15]] }
  0xda   :  { %v430_v16 = vmul.f32 %v1154_v42, %v2556_v54  ;;  %v411_v19 = vadd.f32 %v409_v36, %v389_v33  ;;  %v2558_v3 = vmov %v2556_v54  ;;  %1175 = vtanh.f32 %v535_v53  ;;  %s2244_s24 = sld [smem:[#allocation10 + $0x17]] }
  0xdb   :  { %v431_v7 = vmul.f32 %v1156_v41, %v2558_v3  ;;  %v552_v13 = vadd.f32 %v550_v46, %v1867_v2  ;;  %v452_v20 = vmul.f32 %v1158_v58, %v2560_v4  ;;  %v553_v44 = vadd.f32 %v551_v63, %v1874_v29  ;;  %v1166_v18 = vpop.eup %1165 }
  0xdc   :  { %v432_v48 = vadd.f32 %v430_v16, %v410_v11  ;;  %v568_v23 = vmul.f32 %v567_v5, %v1618_v56  ;;  %v2561_v2 = vmov %v2560_v4  ;;  %v569_v43 = vmul.f32 %v567_v5, %v1629_v60  ;;  %v1168_v9 = vpop.eup %1167 }
  0xdd   :  { %v433_v49 = vadd.f32 %v431_v7, %v411_v19  ;;  %v453_v24 = vmul.f32 %v1160_v17, %v2561_v2  ;;  %v556_v38 = vadd.f32 %v555_v62, %v552_v13  ;;  %v2563_v37 = vstv %s2559_s4  ;;  %s2259_s4 = sld [smem:[#allocation12 + $0x18]] }
  0xde   :  { %v454_v29 = vadd.f32 %v452_v20, %v432_v48  ;;  %v474_v21 = vmul.f32 %v1162_v52, %v2563_v37  ;;  %v557_v39 = vadd.f32 %v555_v62, %v553_v44  ;;  %v571_v25 = vstv %s2096_s19  ;;  %s2228_s19 = sld [smem:[#allocation13 + $0x14]] }
  0xdf   :  { %v455_v26 = vadd.f32 %v453_v24, %v433_v49  ;;  %v2564_v0 = vmov %v2563_v37  ;;  %1177 = vtanh.f32 %v556_v38  ;;  %v572_v5 = vmul.f32 %v571_v25, %v1882_v32 }
  0xe0   :  { %v475_v28 = vmul.f32 %v1164_v55, %v2564_v0  ;;  %v476_v30 = vadd.f32 %v474_v21, %v454_v29  ;;  %v2565_v62 = vstv %s2562_s23  ;;  %1179 = vtanh.f32 %v557_v39  ;;  %s2277_s23 = sld [smem:[#allocation13 + $0x16]] }
  0xe1   :  { %v496_v45 = vmul.f32 %v1166_v18, %v2565_v62  ;;  %v573_v1 = vmul.f32 %v571_v25, %v1889_v40  ;;  %v2566_v31 = vmov %v2565_v62  ;;  %v574_v50 = vadd.f32 %v572_v5, %v568_v23 }
  0xe2   :  { %v477_v27 = vadd.f32 %v475_v28, %v455_v26  ;;  %v497_v10 = vmul.f32 %v1168_v9, %v2566_v31  ;;  %v577_v12 = vstv %s2116_s25  ;;  %v517_v34 = vstv %s2100_s12  ;;  %v1170_v35 = vpop.eup %1169  ;;  %s2232_s12 = sld [smem:[#allocation12 + $0x16]] }
  0xe3   :  { %v539_v6 = vstv %s2107_s21  ;;  %v575_v59 = vadd.f32 %v573_v1, %v569_v43  ;;  %v589_v22 = vstv %s2123_s26  ;;  %v498_v57 = vadd.f32 %v496_v45, %v476_v30  ;;  %v1172_v36 = vpop.eup %1171  ;;  %s2239_s21 = sld [smem:[#allocation9 + $0x17]] }
  0xe4   :  { %v578_v61 = vadd.f32 %v577_v12, %v574_v50  ;;  %v590_v15 = vmul.f32 %v589_v22, %v1618_v56  ;;  %v591_v14 = vmul.f32 %v589_v22, %v1629_v60  ;;  %v499_v47 = vadd.f32 %v497_v10, %v477_v27  ;;  %s2247_s25 = sld [smem:[#allocation12 + $0x17]] }
  0xe5   :  { %v579_v42 = vadd.f32 %v577_v12, %v575_v59  ;;  %v593_v33 = vstv %s2128_s5  ;;  %v599_v51 = vstv %s2136_s8  ;;  %v518_v8 = vmul.f32 %v1170_v35, %v517_v34  ;;  %s2252_s26 = sld [smem:[#allocation9 + $0x18]] }
  0xe6   :  { %1181 = vtanh.f32 %v578_v61  ;;  %v594_v53 = vmul.f32 %v593_v33, %v1882_v32  ;;  %v595_v46 = vmul.f32 %v593_v33, %v1889_v40  ;;  %v519_v41 = vmul.f32 %v1172_v36, %v517_v34  ;;  %v1174_v16 = vpop.eup %1173  ;;  %s2266_s5 = sld [smem:[#allocation9 + $0x19]] }
  0xe7   :  { %1183 = vtanh.f32 %v579_v42  ;;  %v611_v11 = vstv %s2145_s1  ;;  %v615_v54 = vstv %s2152_s9  ;;  %v520_v63 = vadd.f32 %v518_v8, %v498_v57  ;;  %v1176_v7 = vpop.eup %1175  ;;  %s2274_s8 = sld [smem:[#allocation10 + $0x19]] }
  0xe8   :  { %v596_v58 = vadd.f32 %v594_v53, %v590_v15  ;;  %v597_v19 = vadd.f32 %v595_v46, %v591_v14  ;;  %v612_v3 = vmul.f32 %v611_v11, %v1618_v56  ;;  %v521_v13 = vadd.f32 %v519_v41, %v499_v47  ;;  %s2282_s1 = sld [smem:[#allocation12 + $0x19]] }
  0xe9   :  { %v540_v17 = vmul.f32 %v1174_v16, %v539_v6  ;;  %v613_v48 = vmul.f32 %v611_v11, %v1629_v60  ;;  %v616_v4 = vmul.f32 %v615_v54, %v1882_v32  ;;  %v541_v20 = vmul.f32 %v1176_v7, %v539_v6  ;;  %s2288_s9 = sld [smem:[#allocation9 + $0x1a]] }
  0xea   :  { %v600_v44 = vadd.f32 %v599_v51, %v596_v58  ;;  %v601_v23 = vadd.f32 %v599_v51, %v597_v19  ;;  %v617_v52 = vmul.f32 %v615_v54, %v1889_v40  ;;  %v561_v49 = vstv %s2156_s13  ;;  %s2294_s13 = sld [smem:[#allocation10 + $0x1a]] }
  0xeb   :  { %v583_v2 = vstv %s2162_s17  ;;  %v618_v24 = vadd.f32 %v616_v4, %v612_v3  ;;  %v621_v38 = vstv %s2172_s22  ;;  %v542_v43 = vadd.f32 %v540_v17, %v520_v63  ;;  %s2298_s17 = sld [smem:[#allocation12 + $0x1a]] }
  0xec   :  { %1185 = vtanh.f32 %v600_v44  ;;  %v619_v55 = vadd.f32 %v617_v52, %v613_v48  ;;  %v633_v29 = vstv %s2176_s3  ;;  %v1178_v37 = vpop.eup %1177  ;;  %v543_v26 = vadd.f32 %v541_v20, %v521_v13  ;;  %s2304_s22 = sld [smem:[#allocation9 + $0x1b]] }
  0xed   :  { %1187 = vtanh.f32 %v601_v23  ;;  %v622_v21 = vadd.f32 %v621_v38, %v618_v24  ;;  %v634_v39 = vmul.f32 %v633_v29, %v1618_v56  ;;  %v635_v25 = vmul.f32 %v633_v29, %v1629_v60  ;;  %v1180_v18 = vpop.eup %1179  ;;  %s2309_s3 = sld [smem:[#allocation10 + $0x1b]] }
  0xee   :  { %v562_v0 = vmul.f32 %v1178_v37, %v561_v49  ;;  %v623_v28 = vadd.f32 %v621_v38, %v619_v55  ;;  %v637_v5 = vstv %s2184_s11  ;;  %v563_v9 = vmul.f32 %v1180_v18, %v561_v49  ;;  %s2317_s11 = sld [smem:[#allocation9 + $0x1c]] }
  0xef   :  { %1189 = vtanh.f32 %v622_v21  ;;  %v638_v30 = vmul.f32 %v637_v5, %v1882_v32  ;;  %v639_v62 = vmul.f32 %v637_v5, %v1889_v40  ;;  %v605_v45 = vstv %s2167_s2  ;;  %s2300_s2 = sld [smem:[#allocation13 + $0x17]] }
  0xf0   :  { %1191 = vtanh.f32 %v623_v28  ;;  %v643_v1 = vstv %s2188_s28  ;;  %v655_v27 = vstv %s2191_s30  ;;  %v627_v31 = vstv %s2180_s7  ;;  %s2313_s7 = sld [smem:[#allocation12 + $0x1b]] }
  0xf1   :  { %v640_v10 = vadd.f32 %v638_v30, %v634_v39  ;;  %v641_v50 = vadd.f32 %v639_v62, %v635_v25  ;;  %v656_v12 = vmul.f32 %v655_v27, %v1618_v56  ;;  %v564_v34 = vadd.f32 %v562_v0, %v542_v43  ;;  %s2324_s28 = sld [smem:[#allocation10 + $0x1c]] }
  0xf2   :  { %v565_v6 = vadd.f32 %v563_v9, %v543_v26  ;;  %v657_v59 = vmul.f32 %v655_v27, %v1629_v60  ;;  %v659_v22 = vstv %s2195_s6  ;;  %v665_v33 = vstv %s2198_s10  ;;  %s2326_s30 = sld [smem:[#allocation13 + $0x18]] }
  0xf3   :  { %v1182_v57 = vpop.eup %1181  ;;  %v644_v61 = vadd.f32 %v643_v1, %v640_v10  ;;  %v645_v15 = vadd.f32 %v643_v1, %v641_v50  ;;  %v660_v14 = vmul.f32 %v659_v22, %v1882_v32  ;;  %v661_v35 = vmul.f32 %v659_v22, %v1889_v40  ;;  %s2331_s6 = sld [smem:[#allocation12 + $0x1c]] }
  0xf4   :  { %v1184_v47 = vpop.eup %1183  ;;  %v584_v42 = vmul.f32 %v1182_v57, %v583_v2  ;;  %v677_v51 = vstv %s2203_s14  ;;  %v681_v36 = vstv %s2206_s29  ;;  %v687_v54 = vstv %s2211_s15  ;;  %s2334_s10 = sld [smem:[#allocation13 + $0x19]] }
  0xf5   :  { %v585_v8 = vmul.f32 %v1184_v47, %v583_v2  ;;  %1193 = vtanh.f32 %v644_v61  ;;  %v662_v53 = vadd.f32 %v660_v14, %v656_v12  ;;  %v663_v46 = vadd.f32 %v661_v35, %v657_v59  ;;  %s2337_s14 = sld [smem:[#allocation9 + $0x1d]] }
  0xf6   :  { %1195 = vtanh.f32 %v645_v15  ;;  %v678_v41 = vmul.f32 %v677_v51, %v1618_v56  ;;  %v679_v11 = vmul.f32 %v677_v51, %v1629_v60  ;;  %v586_v16 = vadd.f32 %v584_v42, %v564_v34  ;;  %s2339_s29 = sld [smem:[#allocation13 + $0x1a]] }
  0xf7   :  { %v666_v63 = vadd.f32 %v665_v33, %v662_v53  ;;  %v667_v58 = vadd.f32 %v665_v33, %v663_v46  ;;  %v682_v19 = vmul.f32 %v681_v36, %v1882_v32  ;;  %v587_v3 = vadd.f32 %v585_v8, %v565_v6  ;;  %s2345_s15 = sld [smem:[#allocation10 + $0x1d]] }
  0xf8   :  { %v683_v7 = vmul.f32 %v681_v36, %v1889_v40  ;;  %v699_v13 = vstv %s2215_s16  ;;  %v703_v17 = vstv %s2220_s18  ;;  %v709_v55 = vstv %s2232_s12  ;;  %s2350_s16 = sld [smem:[#allocation12 + $0x1d]] }
  0xf9   :  { %v1186_v48 = vpop.eup %1185  ;;  %1197 = vtanh.f32 %v666_v63  ;;  %v684_v4 = vadd.f32 %v682_v19, %v678_v41  ;;  %v700_v20 = vmul.f32 %v699_v13, %v1618_v56  ;;  %v701_v44 = vmul.f32 %v699_v13, %v1629_v60  ;;  %s2355_s18 = sld [smem:[#allocation9 + $0x1e]] }
  0xfa   :  { %v1188_v23 = vpop.eup %1187  ;;  %v606_v52 = vmul.f32 %v1186_v48, %v605_v45  ;;  %1199 = vtanh.f32 %v667_v58  ;;  %v685_v49 = vadd.f32 %v683_v7, %v679_v11  ;;  %v704_v2 = vmul.f32 %v703_v17, %v1882_v32  ;;  %s2367_s12 = sld [smem:[#allocation9 + $0x1f]] }
  0xfb   :  { %v607_v24 = vmul.f32 %v1188_v23, %v605_v45  ;;  %v688_v38 = vadd.f32 %v687_v54, %v684_v4  ;;  %v705_v43 = vmul.f32 %v703_v17, %v1889_v40  ;;  %v649_v21 = vstv %s2223_s0  ;;  %s2358_s0 = sld [smem:[#allocation10 + $0x1e]] }
  0xfc   :  { %v1190_v29 = vpop.eup %1189  ;;  %v608_v37 = vadd.f32 %v606_v52, %v586_v16  ;;  %v689_v39 = vadd.f32 %v687_v54, %v685_v49  ;;  %v706_v25 = vadd.f32 %v704_v2, %v700_v20  ;;  %v721_v30 = vstv %s2239_s21  ;;  %s2377_s21 = sld [smem:[#allocation10 + $0x1f]] }
  0xfd   :  { %v1192_v18 = vpop.eup %1191  ;;  %v609_v26 = vadd.f32 %v607_v24, %v587_v3  ;;  %v628_v0 = vmul.f32 %v1190_v29, %v627_v31  ;;  %1201 = vtanh.f32 %v688_v38  ;;  %v707_v28 = vadd.f32 %v705_v43, %v701_v44 }
  0xfe   :  { %v629_v5 = vmul.f32 %v1192_v18, %v627_v31  ;;  %1203 = vtanh.f32 %v689_v39  ;;  %v710_v9 = vadd.f32 %v709_v55, %v706_v25  ;;  %v671_v62 = vstv %s2228_s19  ;;  %s2365_s19 = sld [smem:[#allocation12 + $0x1e]] }
  0xff   :  { %v711_v45 = vadd.f32 %v709_v55, %v707_v28  ;;  %v722_v1 = vmul.f32 %v721_v30, %v1618_v56  ;;  %v723_v27 = vmul.f32 %v721_v30, %v1629_v60  ;;  %v630_v10 = vadd.f32 %v628_v0, %v608_v37 }
 0x100   :  { %v693_v50 = vstv %s2237_s20  ;;  %1205 = vtanh.f32 %v710_v9  ;;  %v725_v31 = vstv %s2244_s24  ;;  %v631_v12 = vadd.f32 %v629_v5, %v609_v26  ;;  %s2371_s20 = sld [smem:[#allocation13 + $0x1b]] }
 0x101   :  { %1207 = vtanh.f32 %v711_v45  ;;  %v726_v34 = vmul.f32 %v725_v31, %v1882_v32  ;;  %v727_v6 = vmul.f32 %v725_v31, %v1889_v40  ;;  %v731_v22 = vstv %s2247_s25  ;;  %s2383_s24 = sld [smem:[#allocation12 + $0x1f]] }
 0x102   :  { %v1194_v59 = vpop.eup %1193  ;;  %v743_v57 = vstv %s2252_s26  ;;  %v747_v61 = vstv %s2256_s27  ;;  %v753_v15 = vstv %s2259_s4  ;;  %v765_v54 = vstv %s2266_s5  ;;  %s2388_s25 = sld [smem:[#allocation13 + $0x1c]] }
 0x103   :  { %v1196_v14 = vpop.eup %1195  ;;  %v650_v35 = vmul.f32 %v1194_v59, %v649_v21  ;;  %v728_v47 = vadd.f32 %v726_v34, %v722_v1  ;;  %v729_v42 = vadd.f32 %v727_v6, %v723_v27  ;;  %v744_v33 = vmul.f32 %v743_v57, %v1618_v56  ;;  %s2396_s26 = sld [smem:[#allocation13 + $0x1d]] }
 0x104   :  { %v651_v51 = vmul.f32 %v1196_v14, %v649_v21  ;;  %v745_v36 = vmul.f32 %v743_v57, %v1629_v60  ;;  %v748_v8 = vmul.f32 %v747_v61, %v1882_v32  ;;  %v749_v53 = vmul.f32 %v747_v61, %v1889_v40  ;;  %s1084_s27 = sld [smem:[#allocation13 + $0x1e]] }
 0x105   :  { %v652_v46 = vadd.f32 %v650_v35, %v630_v10  ;;  %v732_v41 = vadd.f32 %v731_v22, %v728_v47  ;;  %v733_v11 = vadd.f32 %v731_v22, %v729_v42  ;;  %v766_v3 = vmul.f32 %v765_v54, %v1618_v56  ;;  %s1088_s4 = sld [smem:[#allocation13 + $0x1f]] }
 0x106   :  { %v1198_v16 = vpop.eup %1197  ;;  %v653_v63 = vadd.f32 %v651_v51, %v631_v12  ;;  %v750_v58 = vadd.f32 %v748_v8, %v744_v33  ;;  %v751_v19 = vadd.f32 %v749_v53, %v745_v36  ;;  %v767_v17 = vmul.f32 %v765_v54, %v1629_v60 }
 0x107   :  { %v1200_v7 = vpop.eup %1199  ;;  %v672_v13 = vmul.f32 %v1198_v16, %v671_v62  ;;  %1209 = vtanh.f32 %v732_v41  ;;  %v769_v48 = vstv %s2274_s8  ;;  %v715_v52 = vstv %s2277_s23  ;;  %s2567_s23 = sld [smem:[#allocation42_spill]] }
 0x108   :  { %v673_v4 = vmul.f32 %v1200_v7, %v671_v62  ;;  %1211 = vtanh.f32 %v733_v11  ;;  %v754_v20 = vadd.f32 %v753_v15, %v750_v58  ;;  %v755_v44 = vadd.f32 %v753_v15, %v751_v19 }
 0x109   :  { %v674_v23 = vadd.f32 %v672_v13, %v652_v46  ;;  %v770_v49 = vmul.f32 %v769_v48, %v1882_v32  ;;  %v771_v2 = vmul.f32 %v769_v48, %v1889_v40  ;;  %v775_v43 = vstv %s2282_s1  ;;  %s1382_s1 = smov [#allocation15]  }
 0x10a   :  { %v1202_v24 = vpop.eup %1201  ;;  %v675_v38 = vadd.f32 %v673_v4, %v653_v63  ;;  %1213 = vtanh.f32 %v754_v20  ;;  %v787_v55 = vstv %s2288_s9  ;;  %v791_v0 = vstv %s2294_s13  ;;  %s941_s9 = sshll.u32 %s1382_s1, 4  ;;  %s942_s9 = int_to_ptr.vmem [resolvable:$true] %s941_s9 }
 0x10b   :  { %v1204_v29 = vpop.eup %1203  ;;  %v694_v37 = vmul.f32 %v1202_v24, %v693_v50  ;;  %1215 = vtanh.f32 %v755_v44  ;;  %v772_v21 = vadd.f32 %v770_v49, %v766_v3  ;;  %v773_v39 = vadd.f32 %v771_v2, %v767_v17  ;;  %s1341_s13 = scalar_lea.vmem %s942_s9, 256  ;;  %p1346_p3 = scmp.lt.s32.totalorder %s942_s9, %s942_s9 }
 0x10c   :  { %v695_v25 = vmul.f32 %v1204_v29, %v693_v50  ;;  %v788_v18 = vmul.f32 %v787_v55, %v1618_v56  ;;  %v789_v26 = vmul.f32 %v787_v55, %v1629_v60  ;;  %v792_v30 = vmul.f32 %v791_v0, %v1882_v32  ;;  %p1342_p2 = scmp.ne.s32.totalorder %s942_s9, %s1341_s13  ;;  %p1347_p4 = scmp.lt.s32.totalorder %s1341_s13, %s1341_s13 }
 0x10d   :  { %v1206_v28 = vpop.eup %1205  ;;  %v776_v5 = vadd.f32 %v775_v43, %v772_v21  ;;  %v777_v9 = vadd.f32 %v775_v43, %v773_v39  ;;  %v696_v45 = vadd.f32 %v694_v37, %v674_v23  ;;  %v793_v27 = vmul.f32 %v791_v0, %v1889_v40 }
 0x10e   :  { %v1208_v62 = vpop.eup %1207  ;;  %v716_v1 = vmul.f32 %v1206_v28, %v715_v52  ;;  %v797_v10 = vstv %s2298_s17  ;;  %v737_v50 = vstv %s2300_s2  ;;  %v794_v31 = vadd.f32 %v792_v30, %v788_v18  ;;  %p1348_p5 = por %p1347_p4, %p1346_p3 }
 0x10f   :  { %1217 = vtanh.f32 %v776_v5  ;;  %v697_v12 = vadd.f32 %v695_v25, %v675_v38  ;;  %v795_v34 = vadd.f32 %v793_v27, %v789_v26  ;;  %v809_v6 = vstv %s2304_s22 }
 0x110   :  { %1219 = vtanh.f32 %v777_v9  ;;  %v717_v59 = vmul.f32 %v1208_v62, %v715_v52  ;;  %v798_v22 = vadd.f32 %v797_v10, %v794_v31  ;;  %v810_v57 = vmul.f32 %v809_v6, %v1618_v56  ;;  %p1349_p6 = pnand %p1348_p5, %p1342_p2 }
 0x111   :  { %v811_v61 = vmul.f32 %v809_v6, %v1629_v60  ;;  %v718_v15 = vadd.f32 %v716_v1, %v696_v45  ;;  %v799_v14 = vadd.f32 %v797_v10, %v795_v34  ;;  %v813_v35 = vstv %s2309_s3 }
 0x112   :  { %v819_v47 = vstv %s2313_s7  ;;  %1221 = vtanh.f32 %v798_v22  ;;  %v814_v42 = vmul.f32 %v813_v35, %v1882_v32  ;;  %v815_v33 = vmul.f32 %v813_v35, %v1889_v40 }
 0x113   :  { %v831_v51 = vstv %s2317_s11  ;;  %1223 = vtanh.f32 %v799_v14  ;;  %v835_v46 = vstv %s2324_s28  ;;  %v719_v58 = vadd.f32 %v717_v59, %v697_v12 }
 0x114   :  { %v1210_v36 = vpop.eup %1209  ;;  %v832_v8 = vmul.f32 %v831_v51, %v1618_v56  ;;  %v833_v53 = vmul.f32 %v831_v51, %v1629_v60  ;;  %v816_v54 = vadd.f32 %v814_v42, %v810_v57  ;;  %v817_v16 = vadd.f32 %v815_v33, %v811_v61 }
 0x115   :  { %v1212_v41 = vpop.eup %1211  ;;  %v738_v11 = vmul.f32 %v1210_v36, %v737_v50  ;;  %v836_v63 = vmul.f32 %v835_v46, %v1882_v32  ;;  %v759_v19 = vstv %s2326_s30  ;;  %v837_v3 = vmul.f32 %v835_v46, %v1889_v40 }
 0x116   :  { %v841_v7 = vstv %s2331_s6  ;;  %v739_v17 = vmul.f32 %v1212_v41, %v737_v50  ;;  %v820_v48 = vadd.f32 %v819_v47, %v816_v54  ;;  %v821_v4 = vadd.f32 %v819_v47, %v817_v16 }
 0x117   :  { %v1214_v13 = vpop.eup %1213  ;;  %v838_v20 = vadd.f32 %v836_v63, %v832_v8  ;;  %v781_v23 = vstv %s2334_s10  ;;  %v839_v52 = vadd.f32 %v837_v3, %v833_v53  ;;  %v853_v49 = vstv %s2337_s14 }
 0x118   :  { %v1216_v44 = vpop.eup %1215  ;;  %v740_v2 = vadd.f32 %v738_v11, %v718_v15  ;;  %v760_v24 = vmul.f32 %v1214_v13, %v759_v19  ;;  %1225 = vtanh.f32 %v820_v48  ;;  %v854_v55 = vmul.f32 %v853_v49, %v1618_v56 }
 0x119   :  { %v842_v38 = vadd.f32 %v841_v7, %v838_v20  ;;  %1227 = vtanh.f32 %v821_v4  ;;  %v843_v43 = vadd.f32 %v841_v7, %v839_v52  ;;  %v855_v29 = vmul.f32 %v853_v49, %v1629_v60 }
 0x11a   :  { %v741_v37 = vadd.f32 %v739_v17, %v719_v58  ;;  %v761_v21 = vmul.f32 %v1216_v44, %v759_v19  ;;  %v857_v39 = vstv %s2345_s15  ;;  %v803_v18 = vstv %s2339_s29 }
 0x11b   :  { %1229 = vtanh.f32 %v842_v38  ;;  %v858_v26 = vmul.f32 %v857_v39, %v1882_v32  ;;  %v859_v0 = vmul.f32 %v857_v39, %v1889_v40  ;;  %v762_v5 = vadd.f32 %v760_v24, %v740_v2 }
 0x11c   :  { %v1218_v25 = vpop.eup %1217  ;;  %1231 = vtanh.f32 %v843_v43  ;;  %v863_v9 = vstv %s2350_s16  ;;  %v875_v30 = vstv %s2355_s18  ;;  %v879_v62 = vstv %s2358_s0 }
 0x11d   :  { %v1220_v28 = vpop.eup %1219  ;;  %v782_v45 = vmul.f32 %v1218_v25, %v781_v23  ;;  %v860_v1 = vadd.f32 %v858_v26, %v854_v55  ;;  %v861_v27 = vadd.f32 %v859_v0, %v855_v29  ;;  %v876_v10 = vmul.f32 %v875_v30, %v1618_v56 }
 0x11e   :  { %v763_v50 = vadd.f32 %v761_v21, %v741_v37  ;;  %v877_v31 = vmul.f32 %v875_v30, %v1629_v60  ;;  %v880_v12 = vmul.f32 %v879_v62, %v1882_v32  ;;  %v881_v34 = vmul.f32 %v879_v62, %v1889_v40 }
 0x11f   :  { %v1222_v6 = vpop.eup %1221  ;;  %v783_v59 = vmul.f32 %v1220_v28, %v781_v23  ;;  %v864_v22 = vadd.f32 %v863_v9, %v860_v1  ;;  %v865_v57 = vadd.f32 %v863_v9, %v861_v27  ;;  %v885_v61 = vstv %s2365_s19 }
 0x120   :  { %v1224_v15 = vpop.eup %1223  ;;  %v882_v14 = vadd.f32 %v880_v12, %v876_v10  ;;  %v883_v35 = vadd.f32 %v881_v34, %v877_v31  ;;  %v897_v47 = vstv %s2367_s12  ;;  %v784_v42 = vadd.f32 %v782_v45, %v762_v5 }
 0x121   :  { %v804_v33 = vmul.f32 %v1222_v6, %v803_v18  ;;  %1233 = vtanh.f32 %v864_v22  ;;  %v898_v51 = vmul.f32 %v897_v47, %v1618_v56  ;;  %v899_v53 = vmul.f32 %v897_v47, %v1629_v60 }
 0x122   :  { %1235 = vtanh.f32 %v865_v57  ;;  %v886_v36 = vadd.f32 %v885_v61, %v882_v14  ;;  %v887_v8 = vadd.f32 %v885_v61, %v883_v35  ;;  %v785_v46 = vadd.f32 %v783_v59, %v763_v50 }
 0x123   :  { %v805_v41 = vmul.f32 %v1224_v15, %v803_v18  ;;  %v825_v11 = vstv %s2371_s20  ;;  %v901_v54 = vstv %s2377_s21  ;;  %v907_v56 = vstv %s2383_s24 }
 0x124   :  { %1237 = vtanh.f32 %v886_v36  ;;  %v902_v16 = vmul.f32 %v901_v54, %v1882_v32  ;;  %v903_v63 = vmul.f32 %v901_v54, %v1889_v40  ;;  %v806_v3 = vadd.f32 %v804_v33, %v784_v42 }
 0x125   :  { %v1226_v58 = vpop.eup %1225  ;;  %1239 = vtanh.f32 %v887_v8  ;;  %v807_v48 = vadd.f32 %v805_v41, %v785_v46  ;;  %v847_v20 = vstv %s2388_s25  ;;  %v869_v24 = vstv %s2396_s26 }
 0x126   :  { %v1228_v19 = vpop.eup %1227  ;;  %v826_v7 = vmul.f32 %v1226_v58, %v825_v11  ;;  %v904_v13 = vadd.f32 %v902_v16, %v898_v51  ;;  %v905_v60 = vadd.f32 %v903_v63, %v899_v53  ;;  %v891_v21 = vstv %s1084_s27 }
 0x127   :  { %v827_v4 = vmul.f32 %v1228_v19, %v825_v11  ;;  %v913_v9 = vstv %s1088_s4  ;;  %v919_v50 = vstv %s2567_s23 }
 0x128   :  { %v1230_v17 = vpop.eup %1229  ;;  %v908_v23 = vadd.f32 %v907_v56, %v904_v13  ;;  %v909_v52 = vadd.f32 %v907_v56, %v905_v60  ;;  %v828_v32 = vadd.f32 %v826_v7, %v806_v3 }
 0x129   :  { %v1232_v44 = vpop.eup %1231  ;;  %v848_v49 = vmul.f32 %v1230_v17, %v847_v20  ;;  %v829_v40 = vadd.f32 %v827_v4, %v807_v48 }
 0x12a   :  { %1241 = vtanh.f32 %v908_v23  ;;  %v849_v2 = vmul.f32 %v1232_v44, %v847_v20 }
 0x12b   :  { %1243 = vtanh.f32 %v909_v52  ;;  %v850_v43 = vadd.f32 %v848_v49, %v828_v32 }
 0x12c   :  { %v851_v29 = vadd.f32 %v849_v2, %v829_v40 }
 0x12e   :  { %v1234_v38 = vpop.eup %1233 }
 0x12f   :  { %v1236_v55 = vpop.eup %1235  ;;  %v870_v37 = vmul.f32 %v1234_v38, %v869_v24 }
 0x130   :  { %v871_v39 = vmul.f32 %v1236_v55, %v869_v24 }
 0x131   :  { %v1238_v25 = vpop.eup %1237  ;;  %v872_v26 = vadd.f32 %v870_v37, %v850_v43 }
 0x132   :  { %v1240_v18 = vpop.eup %1239  ;;  %v892_v0 = vmul.f32 %v1238_v25, %v891_v21  ;;  %v873_v28 = vadd.f32 %v871_v39, %v851_v29 }
 0x133   :  { %v893_v5 = vmul.f32 %v1240_v18, %v891_v21 }
 0x134   :  { %v894_v30 = vadd.f32 %v892_v0, %v872_v26 }
 0x135   :  { %v895_v45 = vadd.f32 %v893_v5, %v873_v28 }
 0x137   :  { %v1242_v62 = vpop.eup %1241 }
 0x138   :  { %v1244_v1 = vpop.eup %1243  ;;  %v914_v27 = vmul.f32 %v1242_v62, %v913_v9 }
 0x139   :  { %v915_v10 = vmul.f32 %v1244_v1, %v913_v9 }
 0x13a   :  { %v916_v31 = vadd.f32 %v914_v27, %v894_v30 }
 0x13b   :  { %v917_v12 = vadd.f32 %v915_v10, %v895_v45 }
 0x13c   :  { %v920_v34 = vadd.f32 %v919_v50, %v916_v31 }
 0x13d   :  { %v921_v6 = vadd.f32 %v919_v50, %v917_v12 }
 0x13e   :  { %v1089_v59 = vmul.f32 -1.442695, %v920_v34 }
 0x13f   :  { %v1090_v22 = vmul.f32 -1.442695, %v921_v6 }
 0x140   :  { %1245 = vpow2.f32 %v1089_v59 }
 0x141   :  { %1247 = vpow2.f32 %v1090_v22 }
 0x14d   :  { %v1246_v57 = vpop.eup %1245 }
 0x14e   :  { %v1248_v61 = vpop.eup %1247  ;;  %v928_v15 = vadd.f32 1.0, %v1246_v57 }
 0x14f   :  { %v929_v14 = vadd.f32 1.0, %v1248_v61 }
 0x150   :  { %1249 = vrcp.f32 %v928_v15 }
 0x151   :  { %1251 = vrcp.f32 %v929_v14 }
 0x15d   :  { %v1250_v35 = vpop.eup %1249 }
 0x15e   :  { %v1252_v47 = vpop.eup %1251  ;;  %934 = vst [vmem:[#allocation15] sm:$0xff] %v1250_v35 }
 0x15f   :  { %935 = vst [vmem:[#allocation15 + $0x8] sm:$0xff] %v1252_v47 }
 0x160   :  { %1352 = shalt.err (!%p1349_p6)
}
 0x161   :  { %s2568_s17 = smov 8   ;;  %s2569_s2 = smov 128  }
 0x162   :  { %s2570_s7 = sld [smem:[#allocation43_spill]] }
 0x168   :  { %947 = dma.vmem_to_hbm [thread:$0]  %s942_s9, 256, %s2570_s7, [#allocation5], %s2569_s2, %s2569_s2, %s2568_s17  }
 0x169   :  { %1371 = dma.done.wait [#allocation5], 256  }
 0x16a   :  { %1372 = vsyncadd [#allocation5], 4294967040 }
 0x16b   :  { %951 = vsyncpa [#allocation4], 1 }
 0x16c   :  { %952 = vsyncpa [#allocation8], 1 }
 0x16d   :  { %953 = vsyncpa [#allocation5], 1 }
 0x16e   :  { %954 = vsyncpa [#allocation6], 1 }
 0x16f   :  { %955 = vsyncpa [#allocation11], 1 }
 0x170   :  { %956 = vsyncpa [#allocation14], 1 }

</bundles_post_ra>
